<compile_context>
chip_gen: v7x
topology: tpu7x:2x2x1
jax: 0.10.0
libtpu: 0.0.40
codegen_flags: <defaults>
</compile_context>

<pallas_src>
import itertools

import jax
import jax.numpy as jnp
import numpy as np
from jax.experimental import pallas as pl
from jax.experimental.pallas import tpu as pltpu

EPS = 1e-5


# --------------------------------------------------------------------------- #
# kernels
# --------------------------------------------------------------------------- #
def _pass1_kernel(p_ref, w1_ref, b1_ref, conv_ref, sum_ref, m2_ref):
    """Folded 3x3x3 conv (all 8 parities) as one matmul + BN partial stats."""
    x = p_ref[...].astype(jnp.float32)                       # bf16 -> f32
    conv = jnp.dot(x, w1_ref[...], preferred_element_type=jnp.float32)
    conv = conv + b1_ref[...]
    conv_ref[...] = conv
    # per-column partial stats in centered form (stable cross-tile merge)
    s = jnp.sum(conv, axis=0, keepdims=True)                  # (1, L)
    mu = s * (1.0 / conv.shape[0])
    d = conv - mu
    m2 = jnp.sum(d * d, axis=0, keepdims=True)                # (1, L)
    sum_ref[...] = jnp.broadcast_to(s, sum_ref.shape)         # (8, L) lane-dense
    m2_ref[...] = jnp.broadcast_to(m2, m2_ref.shape)


def _pass2_kernel(conv_ref, scale_ref, shift_ref, w2_ref, b2_ref,
                  out64_ref, out_ref):
    """BN (precomputed scale/shift) + ReLU + 1x1x1 conv (block-diag matmul)."""
    y = conv_ref[...] * scale_ref[...] + shift_ref[...]
    relu = jnp.maximum(y, 0.0)
    out64_ref[...] = relu
    out_ref[...] = jnp.dot(relu, w2_ref[...],
                           preferred_element_type=jnp.float32) + b2_ref[...]


# --------------------------------------------------------------------------- #
# host-side constants / helpers
# --------------------------------------------------------------------------- #
def _parity_fold_matrix():
    """S[p, A, t] = 1 if original 3x3x3 tap t lands on folded 3^3 tap A at parity p."""
    def off(p, t):                       # padded source offset hit by tap t
        return 1 + (p + t - 1) // 2
    S = np.zeros((8, 27, 27), np.float32)
    for pd, ph, pw in itertools.product(range(2), repeat=3):
        p = pd * 4 + ph * 2 + pw
        for td, th, tw in itertools.product(range(3), repeat=3):
            A = off(pd, td) * 9 + off(ph, th) * 3 + off(pw, tw)
            t = td * 9 + th * 3 + tw
            S[p, A, t] = 1.0
    return S


_S_FOLD = _parity_fold_matrix()


def _pick_tile(rows, target):
    t = min(target, rows)
    for cand in range(t, 0, -1):
        if rows % cand == 0 and (cand % 8 == 0 or cand == rows):
            return cand
    return rows


# --------------------------------------------------------------------------- #
# forward
# --------------------------------------------------------------------------- #
def edup_forward(x, params, *, tile_voxels=512):
    """x: (N, C, D, H, W) f32.  Returns (out64, out) in NCDHW like PyTorch."""
    N, C, D, H, W = x.shape
    nc = params["w_last"].shape[0]
    M0 = N * D * H * W                     # original-resolution voxels
    M = M0 * 8                             # upsampled voxels (BN count)

    FOLD = max(1, 128 // (8 * C))          # lane-fold so outputs are >=128 wide
    while FOLD > 1 and M0 % FOLD:
        FOLD //= 2
    rows = M0 // FOLD
    L1 = FOLD * 27 * C                     # patch row width
    L = FOLD * 8 * C                       # conv / out64 row width
    L2 = FOLD * 8 * nc                     # out row width

    TILE_R = _pick_tile(rows, max(8, tile_voxels // FOLD))
    T = rows // TILE_R

    # ---- JAX glue: original-resolution im2col (upsample folded into weights) --
    xt = jnp.transpose(x, (0, 2, 3, 4, 1))                        # NDHWC
    xp = jnp.pad(xt, ((0, 0), (1, 1), (1, 1), (1, 1), (0, 0)))
    slabs = [xp[:, a:a + D, b:b + H, c:c + W, :]
             for a in range(3) for b in range(3) for c in range(3)]
    patches = jnp.stack(slabs, axis=4)                            # (N,D,H,W,27,C)
    patches = patches.reshape(rows, L1).astype(jnp.bfloat16)      # bf16 stream

    # folded 3x3x3 conv weights: (27C, 8C), one column block per output parity
    w_flat = params["w_conv"].reshape(C, C, 27)                   # (co, ci, t)
    w_all = jnp.einsum("pAt,oit->Aipo", jnp.asarray(_S_FOLD), w_flat)
    w_all = w_all.reshape(27 * C, 8 * C)
    w1 = jnp.kron(jnp.eye(FOLD, dtype=jnp.float32), w_all)        # (L1, L)
    b1 = jnp.tile(params["b_conv"], FOLD * 8)[None]               # (1, L)

    # 1x1x1 conv as a block-diagonal matmul over the folded layout
    wl = jnp.transpose(params["w_last"][:, :, 0, 0, 0], (1, 0))   # (C, nc)
    w2 = jnp.kron(jnp.eye(FOLD * 8, dtype=jnp.float32), wl)       # (L, L2)
    b2 = jnp.tile(params["b_last"], FOLD * 8)[None]               # (1, L2)

    cparams = pltpu.CompilerParams(dimension_semantics=("parallel",),
                                   vmem_limit_bytes=32 * 1024 * 1024)

    # ------------------- pass 1: conv + BN partial stats ----------------------
    cost1 = pl.CostEstimate(
        flops=2 * rows * L1 * L + 6 * rows * L,
        transcendentals=0,
        bytes_accessed=rows * L1 * 2 + rows * L * 4 + L1 * L * 4 + T * 8 * L * 8)
    conv_all, part_sum, part_m2 = pl.pallas_call(
        _pass1_kernel,
        grid=(T,),
        in_specs=[
            pl.BlockSpec((TILE_R, L1), lambda i: (i, 0)),
            pl.BlockSpec((L1, L), lambda i: (0, 0)),
            pl.BlockSpec((1, L), lambda i: (0, 0)),
        ],
        out_specs=(
            pl.BlockSpec((TILE_R, L), lambda i: (i, 0)),
            pl.BlockSpec((8, L), lambda i: (i, 0)),
            pl.BlockSpec((8, L), lambda i: (i, 0)),
        ),
        out_shape=(
            jax.ShapeDtypeStruct((rows, L), jnp.float32),
            jax.ShapeDtypeStruct((T * 8, L), jnp.float32),
            jax.ShapeDtypeStruct((T * 8, L), jnp.float32),
        ),
        compiler_params=cparams,
        cost_estimate=cost1,
    )(patches, w1, b1)

    # ---------- tiny JAX glue: stable parallel-variance merge -> scale/shift --
    grp_sum = part_sum.reshape(T, 8, L)[:, 0, :].reshape(T, FOLD * 8, C)
    grp_m2 = part_m2.reshape(T, 8, L)[:, 0, :].reshape(T, FOLD * 8, C)
    n_g = float(TILE_R)
    mean_c = grp_sum.sum(axis=(0, 1)) / M
    grp_mean = grp_sum / n_g
    m2_c = grp_m2.sum(axis=(0, 1)) + (n_g * (grp_mean - mean_c) ** 2).sum(axis=(0, 1))
    var_c = m2_c / M                       # biased var, matches F.batch_norm(training=True)
    scale_c = params["gamma"] * jax.lax.rsqrt(var_c + EPS)
    shift_c = params["beta"] - mean_c * scale_c
    scale_row = jnp.tile(scale_c, FOLD * 8)[None]                 # (1, L)
    shift_row = jnp.tile(shift_c, FOLD * 8)[None]                 # (1, L)

    # ------------------- pass 2: BN + ReLU + 1x1x1 conv -----------------------
    cost2 = pl.CostEstimate(
        flops=2 * rows * L * L2 + 3 * rows * L,
        transcendentals=0,
        bytes_accessed=2 * rows * L * 4 + rows * L2 * 4 + L * L2 * 4)
    out64_f, out_f = pl.pallas_call(
        _pass2_kernel,
        grid=(T,),
        in_specs=[
            pl.BlockSpec((TILE_R, L), lambda i: (i, 0)),
            pl.BlockSpec((1, L), lambda i: (0, 0)),
            pl.BlockSpec((1, L), lambda i: (0, 0)),
            pl.BlockSpec((L, L2), lambda i: (0, 0)),
            pl.BlockSpec((1, L2), lambda i: (0, 0)),
        ],
        out_specs=(
            pl.BlockSpec((TILE_R, L), lambda i: (i, 0)),
            pl.BlockSpec((TILE_R, L2), lambda i: (i, 0)),
        ),
        out_shape=(
            jax.ShapeDtypeStruct((rows, L), jnp.float32),
            jax.ShapeDtypeStruct((rows, L2), jnp.float32),
        ),
        compiler_params=cparams,
        cost_estimate=cost2,
    )(conv_all, scale_row, shift_row, w2, b2)

    # ---- unfold parities back to NCDHW (module interface). NOTE: if a consumer
    # accepted NDHWC these relayouts could be dropped entirely. ----------------
    def unfold(flat, ch):
        y = flat.reshape(N, D, H, W, 2, 2, 2, ch)
        y = jnp.transpose(y, (0, 7, 1, 4, 2, 5, 3, 6))    # N, ch, D,pd, H,ph, W,pw
        return y.reshape(N, ch, 2 * D, 2 * H, 2 * W)

    return unfold(out64_f, C), unfold(out_f, nc)


# --------------------------------------------------------------------------- #
# pure-JAX reference (mirrors the PyTorch forward) + param init
# --------------------------------------------------------------------------- #
def edup_reference(x, params):
    N, C, D, H, W = x.shape
    xt = jnp.transpose(x, (0, 2, 3, 4, 1))
    xu = jnp.repeat(jnp.repeat(jnp.repeat(xt, 2, axis=1), 2, axis=2), 2, axis=3)
    w_dhwio = jnp.transpose(params["w_conv"], (2, 3, 4, 1, 0))
    conv = jax.lax.conv_general_dilated(
        xu, w_dhwio, (1, 1, 1), "SAME",
        dimension_numbers=("NDHWC", "DHWIO", "NDHWC"),
        precision=jax.lax.Precision.HIGHEST)
    conv = conv + params["b_conv"]
    mean = conv.mean(axis=(0, 1, 2, 3), keepdims=True)
    var = ((conv - mean) ** 2).mean(axis=(0, 1, 2, 3), keepdims=True)
    normed = (conv - mean) / jnp.sqrt(var + EPS) * params["gamma"] + params["beta"]
    relu = jnp.maximum(normed, 0.0)
    wl = jnp.transpose(params["w_last"][:, :, 0, 0, 0], (1, 0))
    out = jnp.einsum("ndhwc,ck->ndhwk", relu, wl,
                     precision=jax.lax.Precision.HIGHEST) + params["b_last"]
    return (jnp.transpose(relu, (0, 4, 1, 2, 3)),
            jnp.transpose(out, (0, 4, 1, 2, 3)))


def make_params(key, in_chans, num_classes):
    k1, k2, k3, k4 = jax.random.split(key, 4)
    fan = in_chans * 27
    std_conv = np.sqrt(2.0 / (fan + fan))
    w_conv = std_conv * jax.random.normal(k1, (in_chans, in_chans, 3, 3, 3),
                                          dtype=jnp.float32)
    b_conv = 0.01 * jax.random.normal(k2, (in_chans,), dtype=jnp.float32)
    std_last = np.sqrt(2.0 / (in_chans + num_classes))
    w_last = std_last * jax.random.normal(k3, (num_classes, in_chans, 1, 1, 1),
                                          dtype=jnp.float32)
    b_last = 0.01 * jax.random.normal(k4, (num_classes,), dtype=jnp.float32)
    gamma = jnp.ones((in_chans,), dtype=jnp.float32)
    beta = jnp.zeros((in_chans,), dtype=jnp.float32)
    return dict(w_conv=w_conv, b_conv=b_conv, gamma=gamma, beta=beta,
                w_last=w_last, b_last=b_last)


if __name__ == "__main__":
    key = jax.random.PRNGKey(0)
    kx, kp = jax.random.split(key)

    N, C, D, H, W = 2, 4, 8, 8, 8          # upsampled to 16^3
    num_classes = 16
    x = jax.random.normal(kx, (N, C, D, H, W), dtype=jnp.float32)
    params = make_params(kp, C, num_classes)

    out64, out = jax.jit(edup_forward)(x, params)
    jax.block_until_ready((out64, out))

    ref64, ref = edup_reference(x, params)
    np.testing.assert_allclose(np.asarray(out64), np.asarray(ref64),
                               rtol=1e-2, atol=1e-2)
    np.testing.assert_allclose(np.asarray(out), np.asarray(ref),
                               rtol=1e-2, atol=1e-2)

    assert out64.shape == (N, C, 2 * D, 2 * H, 2 * W)
    assert out.shape == (N, num_classes, 2 * D, 2 * H, 2 * W)
    print("KERNEL_OK")
</pallas_src>

<mosaic_0001>
module attributes {stable_mosaic.version = 11 : i64} {
  func.func @_pass1_kernel(%arg0: i32, %arg1: memref<128x432xbf16, #tpu.memory_space<vmem>>, %arg2: memref<432x128xf32, #tpu.memory_space<vmem>>, %arg3: memref<1x128xf32, #tpu.memory_space<vmem>>, %arg4: memref<128x128xf32, #tpu.memory_space<vmem>>, %arg5: memref<8x128xf32, #tpu.memory_space<vmem>>, %arg6: memref<8x128xf32, #tpu.memory_space<vmem>>) attributes {dimension_semantics = [#tpu.dimension_semantics<parallel>], iteration_bounds = array<i64: 2>, scalar_prefetch = 0 : i64, scratch_operands = 0 : i64, tpu.core_type = #tpu.core_type<tc>, window_params = [{transform_indices = @transform_0, window_bounds = array<i64: 128, 432>}, {pipeline_mode = #tpu.pipeline_mode<synchronous>, transform_indices = @transform_1, window_bounds = array<i64: 432, 128>}, {pipeline_mode = #tpu.pipeline_mode<synchronous>, transform_indices = @transform_2, window_bounds = array<i64: 1, 128>}, {transform_indices = @transform_3, window_bounds = array<i64: 128, 128>}, {transform_indices = @transform_4, window_bounds = array<i64: 8, 128>}, {transform_indices = @transform_5, window_bounds = array<i64: 8, 128>}]} {
    %c0 = arith.constant 0 : index
    %c0_0 = arith.constant 0 : index
    %0 = vector.load %arg1[%c0, %c0_0] : memref<128x432xbf16, #tpu.memory_space<vmem>>, vector<128x432xbf16>
    %1 = arith.extf %0 : vector<128x432xbf16> to vector<128x432xf32>
    %c0_1 = arith.constant 0 : index
    %c0_2 = arith.constant 0 : index
    %2 = vector.load %arg2[%c0_1, %c0_2] : memref<432x128xf32, #tpu.memory_space<vmem>>, vector<432x128xf32>
    %cst = arith.constant dense<0.000000e+00> : vector<128x128xf32>
    %3 = tpu.matmul %1, %2, %cst {dimension_numbers = #tpu.dot_dimension_numbers<[1], [0], [0], [1], [0, 0, 1, 1], [], []>} : vector<128x432xf32>, vector<432x128xf32>, vector<128x128xf32> -> vector<128x128xf32>
    %c0_3 = arith.constant 0 : index
    %c0_4 = arith.constant 0 : index
    %4 = vector.load %arg3[%c0_3, %c0_4] : memref<1x128xf32, #tpu.memory_space<vmem>>, vector<1x128xf32>
    %5 = vector.broadcast %4 : vector<1x128xf32> to vector<128x128xf32>
    %6 = arith.addf %3, %5 : vector<128x128xf32>
    %c0_5 = arith.constant 0 : index
    %c0_6 = arith.constant 0 : index
    %7 = vector.load %arg4[%c0_5, %c0_6] : memref<128x128xf32, #tpu.memory_space<vmem>>, vector<128x128xf32>
    tpu.vector_store %arg4[%c0_5, %c0_6], %6 {strides = array<i32>} : memref<128x128xf32, #tpu.memory_space<vmem>>, vector<128x128xf32>,
    %cst_7 = arith.constant dense<0.000000e+00> : vector<128xf32>
    %8 = vector.multi_reduction <add>, %6, %cst_7 [0] : vector<128x128xf32> to vector<128xf32>
    %9 = vector.shape_cast %8 : vector<128xf32> to vector<1x128xf32>
    %cst_8 = arith.constant 7.812500e-03 : f32
    %10 = vector.broadcast %cst_8 : f32 to vector<1x128xf32>
    %11 = arith.mulf %9, %10 : vector<1x128xf32>
    %12 = vector.broadcast %11 : vector<1x128xf32> to vector<128x128xf32>
    %13 = arith.subf %6, %12 : vector<128x128xf32>
    %14 = arith.mulf %13, %13 : vector<128x128xf32>
    %cst_9 = arith.constant dense<0.000000e+00> : vector<128xf32>
    %15 = vector.multi_reduction <add>, %14, %cst_9 [0] : vector<128x128xf32> to vector<128xf32>
    %16 = vector.shape_cast %15 : vector<128xf32> to vector<1x128xf32>
    %17 = vector.shape_cast %9 : vector<1x128xf32> to vector<1x128xf32>
    %18 = vector.broadcast %17 : vector<1x128xf32> to vector<8x128xf32>
    %c0_10 = arith.constant 0 : index
    %c0_11 = arith.constant 0 : index
    %19 = vector.load %arg5[%c0_10, %c0_11] : memref<8x128xf32, #tpu.memory_space<vmem>>, vector<8x128xf32>
    tpu.vector_store %arg5[%c0_10, %c0_11], %18 {strides = array<i32>} : memref<8x128xf32, #tpu.memory_space<vmem>>, vector<8x128xf32>,
    %20 = vector.shape_cast %16 : vector<1x128xf32> to vector<1x128xf32>
    %21 = vector.broadcast %20 : vector<1x128xf32> to vector<8x128xf32>
    %c0_12 = arith.constant 0 : index
    %c0_13 = arith.constant 0 : index
    %22 = vector.load %arg6[%c0_12, %c0_13] : memref<8x128xf32, #tpu.memory_space<vmem>>, vector<8x128xf32>
    tpu.vector_store %arg6[%c0_12, %c0_13], %21 {strides = array<i32>} : memref<8x128xf32, #tpu.memory_space<vmem>>, vector<8x128xf32>,
    return
  }
  func.func @transform_0(%arg0: i32) -> (i32, i32) {
    %c0_i32 = arith.constant 0 : i32
    %c0_i32_0 = arith.constant 0 : i32
    return %arg0, %c0_i32 : i32, i32
  }
  func.func @transform_1(%arg0: i32) -> (i32, i32) {
    %c0_i32 = arith.constant 0 : i32
    %c0_i32_0 = arith.constant 0 : i32
    %c0_i32_1 = arith.constant 0 : i32
    return %c0_i32, %c0_i32_0 : i32, i32
  }
  func.func @transform_2(%arg0: i32) -> (i32, i32) {
    %c0_i32 = arith.constant 0 : i32
    %c0_i32_0 = arith.constant 0 : i32
    %c0_i32_1 = arith.constant 0 : i32
    return %c0_i32, %c0_i32_0 : i32, i32
  }
  func.func @transform_3(%arg0: i32) -> (i32, i32) {
    %c0_i32 = arith.constant 0 : i32
    %c0_i32_0 = arith.constant 0 : i32
    return %arg0, %c0_i32 : i32, i32
  }
  func.func @transform_4(%arg0: i32) -> (i32, i32) {
    %c0_i32 = arith.constant 0 : i32
    %c0_i32_0 = arith.constant 0 : i32
    return %arg0, %c0_i32 : i32, i32
  }
  func.func @transform_5(%arg0: i32) -> (i32, i32) {
    %c0_i32 = arith.constant 0 : i32
    %c0_i32_0 = arith.constant 0 : i32
    return %arg0, %c0_i32 : i32, i32
  }
}

module attributes {stable_mosaic.version = 11 : i64} {
  func.func @_pass2_kernel(%arg0: i32, %arg1: memref<128x128xf32, #tpu.memory_space<vmem>>, %arg2: memref<1x128xf32, #tpu.memory_space<vmem>>, %arg3: memref<1x128xf32, #tpu.memory_space<vmem>>, %arg4: memref<128x512xf32, #tpu.memory_space<vmem>>, %arg5: memref<1x512xf32, #tpu.memory_space<vmem>>, %arg6: memref<128x128xf32, #tpu.memory_space<vmem>>, %arg7: memref<128x512xf32, #tpu.memory_space<vmem>>) attributes {dimension_semantics = [#tpu.dimension_semantics<parallel>], iteration_bounds = array<i64: 2>, scalar_prefetch = 0 : i64, scratch_operands = 0 : i64, tpu.core_type = #tpu.core_type<tc>, window_params = [{transform_indices = @transform_0, window_bounds = array<i64: 128, 128>}, {pipeline_mode = #tpu.pipeline_mode<synchronous>, transform_indices = @transform_1, window_bounds = array<i64: 1, 128>}, {pipeline_mode = #tpu.pipeline_mode<synchronous>, transform_indices = @transform_2, window_bounds = array<i64: 1, 128>}, {pipeline_mode = #tpu.pipeline_mode<synchronous>, transform_indices = @transform_3, window_bounds = array<i64: 128, 512>}, {pipeline_mode = #tpu.pipeline_mode<synchronous>, transform_indices = @transform_4, window_bounds = array<i64: 1, 512>}, {transform_indices = @transform_5, window_bounds = array<i64: 128, 128>}, {transform_indices = @transform_6, window_bounds = array<i64: 128, 512>}]} {
    %c0 = arith.constant 0 : index
    %c0_0 = arith.constant 0 : index
    %0 = vector.load %arg1[%c0, %c0_0] : memref<128x128xf32, #tpu.memory_space<vmem>>, vector<128x128xf32>
    %c0_1 = arith.constant 0 : index
    %c0_2 = arith.constant 0 : index
    %1 = vector.load %arg2[%c0_1, %c0_2] : memref<1x128xf32, #tpu.memory_space<vmem>>, vector<1x128xf32>
    %2 = vector.broadcast %1 : vector<1x128xf32> to vector<128x128xf32>
    %3 = arith.mulf %0, %2 : vector<128x128xf32>
    %c0_3 = arith.constant 0 : index
    %c0_4 = arith.constant 0 : index
    %4 = vector.load %arg3[%c0_3, %c0_4] : memref<1x128xf32, #tpu.memory_space<vmem>>, vector<1x128xf32>
    %5 = vector.broadcast %4 : vector<1x128xf32> to vector<128x128xf32>
    %6 = arith.addf %3, %5 : vector<128x128xf32>
    %cst = arith.constant 0.000000e+00 : f32
    %7 = vector.broadcast %cst : f32 to vector<128x128xf32>
    %8 = arith.maximumf %6, %7 : vector<128x128xf32>
    %c0_5 = arith.constant 0 : index
    %c0_6 = arith.constant 0 : index
    %9 = vector.load %arg6[%c0_5, %c0_6] : memref<128x128xf32, #tpu.memory_space<vmem>>, vector<128x128xf32>
    tpu.vector_store %arg6[%c0_5, %c0_6], %8 {strides = array<i32>} : memref<128x128xf32, #tpu.memory_space<vmem>>, vector<128x128xf32>,
    %c0_7 = arith.constant 0 : index
    %c0_8 = arith.constant 0 : index
    %10 = vector.load %arg4[%c0_7, %c0_8] : memref<128x512xf32, #tpu.memory_space<vmem>>, vector<128x512xf32>
    %cst_9 = arith.constant dense<0.000000e+00> : vector<128x512xf32>
    %11 = tpu.matmul %8, %10, %cst_9 {dimension_numbers = #tpu.dot_dimension_numbers<[1], [0], [0], [1], [0, 0, 1, 1], [], []>} : vector<128x128xf32>, vector<128x512xf32>, vector<128x512xf32> -> vector<128x512xf32>
    %c0_10 = arith.constant 0 : index
    %c0_11 = arith.constant 0 : index
    %12 = vector.load %arg5[%c0_10, %c0_11] : memref<1x512xf32, #tpu.memory_space<vmem>>, vector<1x512xf32>
    %13 = vector.broadcast %12 : vector<1x512xf32> to vector<128x512xf32>
    %14 = arith.addf %11, %13 : vector<128x512xf32>
    %c0_12 = arith.constant 0 : index
    %c0_13 = arith.constant 0 : index
    %15 = vector.load %arg7[%c0_12, %c0_13] : memref<128x512xf32, #tpu.memory_space<vmem>>, vector<128x512xf32>
    tpu.vector_store %arg7[%c0_12, %c0_13], %14 {strides = array<i32>} : memref<128x512xf32, #tpu.memory_space<vmem>>, vector<128x512xf32>,
    return
  }
  func.func @transform_0(%arg0: i32) -> (i32, i32) {
    %c0_i32 = arith.constant 0 : i32
    %c0_i32_0 = arith.constant 0 : i32
    return %arg0, %c0_i32 : i32, i32
  }
  func.func @transform_1(%arg0: i32) -> (i32, i32) {
    %c0_i32 = arith.constant 0 : i32
    %c0_i32_0 = arith.constant 0 : i32
    %c0_i32_1 = arith.constant 0 : i32
    return %c0_i32, %c0_i32_0 : i32, i32
  }
  func.func @transform_2(%arg0: i32) -> (i32, i32) {
    %c0_i32 = arith.constant 0 : i32
    %c0_i32_0 = arith.constant 0 : i32
    %c0_i32_1 = arith.constant 0 : i32
    return %c0_i32, %c0_i32_0 : i32, i32
  }
  func.func @transform_3(%arg0: i32) -> (i32, i32) {
    %c0_i32 = arith.constant 0 : i32
    %c0_i32_0 = arith.constant 0 : i32
    %c0_i32_1 = arith.constant 0 : i32
    return %c0_i32, %c0_i32_0 : i32, i32
  }
  func.func @transform_4(%arg0: i32) -> (i32, i32) {
    %c0_i32 = arith.constant 0 : i32
    %c0_i32_0 = arith.constant 0 : i32
    %c0_i32_1 = arith.constant 0 : i32
    return %c0_i32, %c0_i32_0 : i32, i32
  }
  func.func @transform_5(%arg0: i32) -> (i32, i32) {
    %c0_i32 = arith.constant 0 : i32
    %c0_i32_0 = arith.constant 0 : i32
    return %arg0, %c0_i32 : i32, i32
  }
  func.func @transform_6(%arg0: i32) -> (i32, i32) {
    %c0_i32 = arith.constant 0 : i32
    %c0_i32_0 = arith.constant 0 : i32
    return %arg0, %c0_i32 : i32, i32
  }
}

</mosaic_0001>

<bundles_post_ra>
// kernel: tile.23
= control target key start
LH: loop header
LB: loop body
LE: loop exit
PB: predicated region body
PF: predicated region fallthrough
CT: control target
= control target key end

     0   :  { %s40_s0 = inlined_call_operand.vmem [shape: f32[4], index: 0, kind: input, shape index: {}]   ;;  %s41_s1 = inlined_call_operand.vmem [shape: f32[32,4], index: 1, kind: output, shape index: {}]  }
   0x1   :  { %v4_v0 = vld [vmem:[%s40_s0] ss:$0 sm:$0xff] }
   0x2   :  { %5 = vst [vmem:[%s41_s1] sm:$0xff] %v4_v0  ;;  %12 = vst [vmem:[%s41_s1 + $0x8] sm:$0xff] %v4_v0 }
   0x3   :  { %13 = vst [vmem:[%s41_s1 + $0x10] sm:$0xff] %v4_v0  ;;  %14 = vst [vmem:[%s41_s1 + $0x18] sm:$0xff] %v4_v0 }

// kernel: tile.24
= control target key start
LH: loop header
LB: loop body
LE: loop exit
PB: predicated region body
PF: predicated region fallthrough
CT: control target
= control target key end

     0   :  { %s259_s10 = smov 124   ;;  %s260_s11 = smov 116   ;;  %vm3_vm0 = vcmask 31744   ;;  %vm9_vm1 = vcmask 1048544   ;;  %vm15_vm2 = vcmask 1015744   ;;  %vm21_vm3 = vcmask 982944   ;;  %s399_s0 = inlined_call_operand.vmem [shape: f32[32,4], index: 0, kind: input, shape index: {}]   ;;  %s400_s1 = inlined_call_operand.vmem [shape: f32[1,128], index: 1, kind: output, shape index: {}]  }
   0x1   :  { %v197_v0 = vld [vmem:[%s399_s0 + $0x1f] sm:$0x1]   ;;  %v199_v1 = vld [vmem:[%s399_s0 + $0x1d] sm:$0x1]   ;;  %v198_v2 = vld [vmem:[%s399_s0 + $0x1e] sm:$0x1]  }
   0x2   :  { %7 = vrot.lane.b32.xlu0 %v197_v0, %s259_s10  ;;  %19 = vrot.lane.b32.xlu1 %v199_v1, %s260_s11  ;;  %v200_v3 = vld [vmem:[%s399_s0 + $0x1c] sm:$0x1]   ;;  %s261_s16 = smov 120   ;;  %s262_s17 = smov 112   ;;  %v201_v4 = vld [vmem:[%s399_s0 + $0x1b] sm:$0x1]  }
   0x3   :  { %v202_v5 = vld [vmem:[%s399_s0 + $0x1a] sm:$0x1]   ;;  %s263_s22 = smov 108   ;;  %s264_s23 = smov 104   ;;  %v203_v6 = vld [vmem:[%s399_s0 + $0x19] sm:$0x1]  }
   0x4   :  { %v204_v7 = vld [vmem:[%s399_s0 + $0x18] sm:$0x1]   ;;  %s265_s28 = smov 100   ;;  %s266_s29 = smov 96   ;;  %v205_v8 = vld [vmem:[%s399_s0 + $0x17] sm:$0x1]  }
   0x5   :  { %v206_v9 = vld [vmem:[%s399_s0 + $0x16] sm:$0x1]   ;;  %v2_v10 = vld [vmem:[%s399_s0] sm:$0x1]   ;;  %s267_s7 = smov 92   ;;  %s268_s8 = smov 88  }
   0x6   :  { %13 = vrot.lane.b32.xlu0 %v198_v2, %s261_s16  ;;  %25 = vrot.lane.b32.xlu1 %v200_v3, %s262_s17  ;;  %4 = vst.msk [vmem:[#allocation0] sm:$0x1] %vm3_vm0, %v2_v10   ;;  %v207_v11 = vld [vmem:[%s399_s0 + $0x15] sm:$0x1]   ;;  %v208_v12 = vld [vmem:[%s399_s0 + $0x14] sm:$0x1]  }
   0x7   :  { %s269_s13 = smov 84   ;;  %s270_s14 = smov 80   ;;  %v209_v13 = vld [vmem:[%s399_s0 + $0x13] sm:$0x1]   ;;  %v210_v14 = vld [vmem:[%s399_s0 + $0x12] sm:$0x1]  }
   0x8   :  { %s271_s19 = smov 76   ;;  %s272_s20 = smov 72   ;;  %v211_v15 = vld [vmem:[%s399_s0 + $0x11] sm:$0x1]   ;;  %v212_v16 = vld [vmem:[%s399_s0 + $0x10] sm:$0x1]  }
   0x9   :  { %s273_s25 = smov 68   ;;  %s274_s26 = smov 64   ;;  %v213_v17 = vld [vmem:[%s399_s0 + $0xf] sm:$0x1]   ;;  %v214_v18 = vld [vmem:[%s399_s0 + $0xe] sm:$0x1]  }
   0xa   :  { %31 = vrot.lane.b32.xlu0 %v201_v4, %s263_s22  ;;  %37 = vrot.lane.b32.xlu1 %v202_v5, %s264_s23  ;;  %s275_s2 = smov 60   ;;  %s276_s3 = smov 56   ;;  %v215_v19 = vld [vmem:[%s399_s0 + $0xd] sm:$0x1]   ;;  %v216_v20 = vld [vmem:[%s399_s0 + $0xc] sm:$0x1]  }
   0xb   :  { %s278_s9 = smov 48   ;;  %v217_v21 = vld [vmem:[%s399_s0 + $0xb] sm:$0x1]   ;;  %v218_v22 = vld [vmem:[%s399_s0 + $0xa] sm:$0x1]   ;;  %s280_s15 = smov 40  }
   0xc   :  { %v219_v23 = vld [vmem:[%s399_s0 + $0x9] sm:$0x1]   ;;  %v220_v24 = vld [vmem:[%s399_s0 + $0x8] sm:$0x1]   ;;  %s282_s21 = smov 32   ;;  %s284_s27 = smov 24  }
   0xd   :  { %v221_v25 = vld [vmem:[%s399_s0 + $0x7] sm:$0x1]   ;;  %v222_v26 = vld [vmem:[%s399_s0 + $0x6] sm:$0x1]   ;;  %v223_v27 = vld [vmem:[%s399_s0 + $0x5] sm:$0x1]  }
   0xe   :  { %43 = vrot.lane.b32.xlu0 %v203_v6, %s265_s28  ;;  %49 = vrot.lane.b32.xlu1 %v204_v7, %s266_s29  ;;  %v224_v28 = vld [vmem:[%s399_s0 + $0x4] sm:$0x1]   ;;  %s286_s4 = smov 16   ;;  %v225_v29 = vld [vmem:[%s399_s0 + $0x3] sm:$0x1]   ;;  %s288_s10 = smov 8  }
   0xf   :  { %v226_v30 = vld [vmem:[%s399_s0 + $0x2] sm:$0x1]   ;;  %v227_v31 = vld [vmem:[%s399_s0 + $0x1] sm:$0x1]   ;;  %s289_s0 = smov 4   ;;  %vm27_vm4 = vcmask 950144  }
  0x10   :  { %vm33_vm5 = vcmask 917344   ;;  %vm39_vm6 = vcmask 884544   ;;  %vm45_vm7 = vcmask 851744   ;;  %vm51_vm8 = vcmask 818944  }
  0x11   :  { %vm57_vm9 = vcmask 786144   ;;  %vm63_vm10 = vcmask 753344   ;;  %vm69_vm11 = vcmask 720544   ;;  %vm75_vm12 = vcmask 687744  }
  0x12   :  { %55 = vrot.lane.b32.xlu0 %v205_v8, %s267_s7  ;;  %61 = vrot.lane.b32.xlu1 %v206_v9, %s268_s8  ;;  %s277_s8 = smov 52   ;;  %vm81_vm13 = vcmask 654944   ;;  %vm87_vm14 = vcmask 622144   ;;  %vm93_vm15 = vcmask 589344   ;;  %vm99_vm0 = vcmask 556544  }
  0x16   :  { %67 = vrot.lane.b32.xlu0 %v207_v11, %s269_s13  ;;  %73 = vrot.lane.b32.xlu1 %v208_v12, %s270_s14  ;;  %s279_s14 = smov 44  }
  0x1a   :  { %79 = vrot.lane.b32.xlu0 %v209_v13, %s271_s19  ;;  %85 = vrot.lane.b32.xlu1 %v210_v14, %s272_s20  ;;  %s281_s20 = smov 36  }
  0x1e   :  { %91 = vrot.lane.b32.xlu0 %v211_v15, %s273_s25  ;;  %97 = vrot.lane.b32.xlu1 %v212_v16, %s274_s26  ;;  %s283_s26 = smov 28  }
  0x22   :  { %103 = vrot.lane.b32.xlu0 %v213_v17, %s275_s2  ;;  %109 = vrot.lane.b32.xlu1 %v214_v18, %s276_s3  ;;  %s285_s3 = smov 20  }
  0x26   :  { %115 = vrot.lane.b32.xlu0 %v215_v19, %s277_s8  ;;  %121 = vrot.lane.b32.xlu1 %v216_v20, %s278_s9  ;;  %s287_s9 = smov 12  }
  0x2a   :  { %127 = vrot.lane.b32.xlu0 %v217_v21, %s279_s14  ;;  %133 = vrot.lane.b32.xlu1 %v218_v22, %s280_s15 }
  0x2e   :  { %139 = vrot.lane.b32.xlu0 %v219_v23, %s281_s20  ;;  %145 = vrot.lane.b32.xlu1 %v220_v24, %s282_s21 }
  0x32   :  { %151 = vrot.lane.b32.xlu0 %v221_v25, %s283_s26  ;;  %157 = vrot.lane.b32.xlu1 %v222_v26, %s284_s27 }
  0x36   :  { %163 = vrot.lane.b32.xlu0 %v223_v27, %s285_s3  ;;  %169 = vrot.lane.b32.xlu1 %v224_v28, %s286_s4 }
  0x3a   :  { %175 = vrot.lane.b32.xlu0 %v225_v29, %s287_s9  ;;  %181 = vrot.lane.b32.xlu1 %v226_v30, %s288_s10 }
  0x3e   :  { %187 = vrot.lane.b32.xlu0 %v227_v31, %s289_s0 }
  0x74   :  { %v8_v32 = vpop.permute.xlu0 %7   ;;  %v20_v33 = vpop.permute.xlu1 %19  }
  0x75   :  { %10 = vst.msk [vmem:[#allocation0] sm:$0x1] %vm9_vm1, %v8_v32   ;;  %vm105_vm1 = vcmask 523744  }
  0x78   :  { %v14_v34 = vpop.permute.xlu0 %13   ;;  %v26_v35 = vpop.permute.xlu1 %25  }
  0x79   :  { %16 = vst.msk [vmem:[#allocation0] sm:$0x1] %vm15_vm2, %v14_v34   ;;  %vm111_vm2 = vcmask 490944  }
  0x7a   :  { %22 = vst.msk [vmem:[#allocation0] sm:$0x1] %vm21_vm3, %v20_v33   ;;  %vm117_vm3 = vcmask 458144  }
  0x7b   :  { %28 = vst.msk [vmem:[#allocation0] sm:$0x1] %vm27_vm4, %v26_v35   ;;  %vm123_vm4 = vcmask 425344  }
  0x7c   :  { %v32_v36 = vpop.permute.xlu0 %31   ;;  %v38_v37 = vpop.permute.xlu1 %37  }
  0x7d   :  { %34 = vst.msk [vmem:[#allocation0] sm:$0x1] %vm33_vm5, %v32_v36   ;;  %vm129_vm5 = vcmask 392544  }
  0x7e   :  { %40 = vst.msk [vmem:[#allocation0] sm:$0x1] %vm39_vm6, %v38_v37   ;;  %vm135_vm6 = vcmask 359744  }
  0x80   :  { %v44_v38 = vpop.permute.xlu0 %43   ;;  %v50_v39 = vpop.permute.xlu1 %49  }
  0x81   :  { %46 = vst.msk [vmem:[#allocation0] sm:$0x1] %vm45_vm7, %v44_v38   ;;  %vm141_vm7 = vcmask 326944  }
  0x82   :  { %52 = vst.msk [vmem:[#allocation0] sm:$0x1] %vm51_vm8, %v50_v39   ;;  %vm147_vm8 = vcmask 294144  }
  0x84   :  { %v56_v40 = vpop.permute.xlu0 %55   ;;  %v62_v41 = vpop.permute.xlu1 %61  }
  0x85   :  { %58 = vst.msk [vmem:[#allocation0] sm:$0x1] %vm57_vm9, %v56_v40   ;;  %vm153_vm9 = vcmask 261344  }
  0x86   :  { %64 = vst.msk [vmem:[#allocation0] sm:$0x1] %vm63_vm10, %v62_v41   ;;  %vm159_vm10 = vcmask 228544  }
  0x88   :  { %v68_v42 = vpop.permute.xlu0 %67   ;;  %v74_v43 = vpop.permute.xlu1 %73  }
  0x89   :  { %70 = vst.msk [vmem:[#allocation0] sm:$0x1] %vm69_vm11, %v68_v42   ;;  %vm165_vm11 = vcmask 195744  }
  0x8a   :  { %76 = vst.msk [vmem:[#allocation0] sm:$0x1] %vm75_vm12, %v74_v43   ;;  %vm171_vm12 = vcmask 162944  }
  0x8c   :  { %v80_v44 = vpop.permute.xlu0 %79   ;;  %v86_v45 = vpop.permute.xlu1 %85  }
  0x8d   :  { %82 = vst.msk [vmem:[#allocation0] sm:$0x1] %vm81_vm13, %v80_v44   ;;  %vm177_vm13 = vcmask 130144  }
  0x8e   :  { %88 = vst.msk [vmem:[#allocation0] sm:$0x1] %vm87_vm14, %v86_v45   ;;  %vm183_vm14 = vcmask 97344  }
  0x90   :  { %v92_v46 = vpop.permute.xlu0 %91   ;;  %v98_v47 = vpop.permute.xlu1 %97  }
  0x91   :  { %94 = vst.msk [vmem:[#allocation0] sm:$0x1] %vm93_vm15, %v92_v46   ;;  %vm189_vm15 = vcmask 64544  }
  0x92   :  { %100 = vst.msk [vmem:[#allocation0] sm:$0x1] %vm99_vm0, %v98_v47  }
  0x94   :  { %v104_v48 = vpop.permute.xlu0 %103   ;;  %v110_v49 = vpop.permute.xlu1 %109  }
  0x95   :  { %106 = vst.msk [vmem:[#allocation0] sm:$0x1] %vm105_vm1, %v104_v48  }
  0x96   :  { %112 = vst.msk [vmem:[#allocation0] sm:$0x1] %vm111_vm2, %v110_v49  }
  0x98   :  { %v116_v50 = vpop.permute.xlu0 %115   ;;  %v122_v51 = vpop.permute.xlu1 %121  }
  0x99   :  { %118 = vst.msk [vmem:[#allocation0] sm:$0x1] %vm117_vm3, %v116_v50  }
  0x9a   :  { %124 = vst.msk [vmem:[#allocation0] sm:$0x1] %vm123_vm4, %v122_v51  }
  0x9c   :  { %v128_v52 = vpop.permute.xlu0 %127   ;;  %v134_v53 = vpop.permute.xlu1 %133  }
  0x9d   :  { %130 = vst.msk [vmem:[#allocation0] sm:$0x1] %vm129_vm5, %v128_v52  }
  0x9e   :  { %136 = vst.msk [vmem:[#allocation0] sm:$0x1] %vm135_vm6, %v134_v53  }
  0xa0   :  { %v140_v54 = vpop.permute.xlu0 %139   ;;  %v146_v55 = vpop.permute.xlu1 %145  }
  0xa1   :  { %142 = vst.msk [vmem:[#allocation0] sm:$0x1] %vm141_vm7, %v140_v54  }
  0xa2   :  { %148 = vst.msk [vmem:[#allocation0] sm:$0x1] %vm147_vm8, %v146_v55  }
  0xa4   :  { %v152_v56 = vpop.permute.xlu0 %151   ;;  %v158_v57 = vpop.permute.xlu1 %157  }
  0xa5   :  { %154 = vst.msk [vmem:[#allocation0] sm:$0x1] %vm153_vm9, %v152_v56  }
  0xa6   :  { %160 = vst.msk [vmem:[#allocation0] sm:$0x1] %vm159_vm10, %v158_v57  }
  0xa8   :  { %v164_v58 = vpop.permute.xlu0 %163   ;;  %v170_v59 = vpop.permute.xlu1 %169  }
  0xa9   :  { %166 = vst.msk [vmem:[#allocation0] sm:$0x1] %vm165_vm11, %v164_v58  }
  0xaa   :  { %172 = vst.msk [vmem:[#allocation0] sm:$0x1] %vm171_vm12, %v170_v59  }
  0xac   :  { %v176_v60 = vpop.permute.xlu0 %175   ;;  %v182_v61 = vpop.permute.xlu1 %181  }
  0xad   :  { %178 = vst.msk [vmem:[#allocation0] sm:$0x1] %vm177_vm13, %v176_v60  }
  0xae   :  { %184 = vst.msk [vmem:[#allocation0] sm:$0x1] %vm183_vm14, %v182_v61  }
  0xb0   :  { %v188_v62 = vpop.permute.xlu0 %187  }
  0xb1   :  { %190 = vst.msk [vmem:[#allocation0] sm:$0x1] %vm189_vm15, %v188_v62  }
  0xb8   :  { %v194_v63 = vld [vmem:[#allocation0] sm:$0x1] }
  0xb9   :  { %196 = vst [vmem:[%s400_s1] sm:$0x1] %v194_v63 }

// kernel: edup_forward.2
= control target key start
LH: loop header
LB: loop body
LE: loop exit
PB: predicated region body
PF: predicated region fallthrough
CT: control target
= control target key end

     0   :  { %s1206_s18 = smov 0   ;;  %s1634_s0 = inlined_call_operand.vmem [shape: bf16[256,432], index: 0, kind: input, shape index: {}]   ;;  %s1635_s1 = inlined_call_operand.vmem [shape: f32[432,128], index: 1, kind: input, shape index: {}]   ;;  %s1636_s2 = inlined_call_operand.vmem [shape: f32[1,128], index: 2, kind: input, shape index: {}]   ;;  %s1637_s3 = inlined_call_operand.vmem [shape: f32[256,128], index: 3, kind: output, shape index: {0}]   ;;  %s1638_s4 = inlined_call_operand.vmem [shape: f32[16,128], index: 4, kind: output, shape index: {1}]   ;;  %s1639_s5 = inlined_call_operand.vmem [shape: f32[16,128], index: 5, kind: output, shape index: {2}]  }
   0x1 LB: > { %s1212_s19 = sadd.s32 4294967295, %s1173_s18   ;;  %p963_p0 = scmp.ge.s32.totalorder %s1173_s18, 1  ;;  %s1173_s18 = sphi %s1206_s18, %s16_s18  }
   0x2   : > { %p194_p1 = scmp.lt.s32.totalorder %s1173_s18, 3 }
   0x4   : > { %p195_p2 = pnand %p963_p0, %p194_p1 }
   0x5   : > { %v364_v0 = vld [vmem:[%s1635_s1 + $0x80] sm:$0xff] (!%p195_p2)  ;;  %v365_v1 = vld [vmem:[%s1635_s1 + $0x88] sm:$0xff] (!%p195_p2)  ;;  %s964_s26 = sshll.u32 (!%p195_p2), %s1212_s19, 4  ;;  %v1175_v3 = vmov (!%p195_p2), 0.0|0.0   ;;  %v366_v10 = vld [vmem:[%s1635_s1 + $0x90] sm:$0xff] (!%p195_p2)  ;;  %vm409_vm0 = vcmask (!%p195_p2), 392192  }
   0x6   : > { %198 = sbr.rel (%p195_p2) target bundleno = 410 (0x19a), region = 32  ;;  %v380_v2 = vld [vmem:[%s1635_s1 + $0x100] sm:$0xff] (!%p195_p2)  ;;  %1136 = vmatprep.subr.bf16.mxu1 (!%p195_p2), %v1175_v3  ;;  %v1071_v4 = vpack.c.bf16 (!%p195_p2), %v365_v1, %v364_v0  ;;  %v381_v5 = vld [vmem:[%s1635_s1 + $0x108] sm:$0xff] (!%p195_p2)  ;;  %v367_v11 = vld [vmem:[%s1635_s1 + $0x98] sm:$0xff] (!%p195_p2)  ;;  %p1249_p3 = scmp.lt.s32.totalorder (!%p195_p2), %s964_s26, 31 }
   0x7   : > { %v348_v6 = vld [vmem:[%s1635_s1] sm:$0xff] (!%p195_p2)  ;;  %v349_v7 = vld [vmem:[%s1635_s1 + $0x8] sm:$0xff] (!%p195_p2)  ;;  %v1236_v8 = vpack.c.bf16 (!%p195_p2), %v381_v5, %v380_v2  ;;  %v382_v12 = vld [vmem:[%s1635_s1 + $0x110] sm:$0xff] (!%p195_p2)  ;;  %v1075_v13 = vpack.c.bf16 (!%p195_p2), %v367_v11, %v366_v10  ;;  %p244_p4 = scmp.lt.s32.totalorder (!%p195_p2), %s1212_s19, 1 }
   0x8   : > { %v1073_v9 = vpack.c.bf16 (!%p195_p2), %v349_v7, %v348_v6  ;;  %1072 = vmatprep.subr.bf16.mxu0 (!%p195_p2), %v1071_v4  ;;  %v383_v14 = vld [vmem:[%s1635_s1 + $0x118] sm:$0xff] (!%p195_p2)  ;;  %v350_v15 = vld [vmem:[%s1635_s1 + $0x10] sm:$0xff] (!%p195_p2)  ;;  %v368_v19 = vld [vmem:[%s1635_s1 + $0xa0] sm:$0xff] (!%p195_p2) }
   0x9   : > { %v351_v16 = vld [vmem:[%s1635_s1 + $0x18] sm:$0xff] (!%p195_p2)  ;;  %1147 = vmatpush1.bf16.msra.mxu1 (!%p195_p2), %v1236_v8  ;;  %v1263_v17 = vpack.c.bf16 (!%p195_p2), %v383_v14, %v382_v12  ;;  %v369_v20 = vld [vmem:[%s1635_s1 + $0xa8] sm:$0xff] (!%p195_p2)  ;;  %v384_v21 = vld [vmem:[%s1635_s1 + $0x120] sm:$0xff] (!%p195_p2) }
   0xa   : > { %1074 = vmatpush3.bf16.msra.mxu0 (!%p195_p2), %v1073_v9  ;;  %v1077_v18 = vpack.c.bf16 (!%p195_p2), %v351_v16, %v350_v15  ;;  %1137 = vmatprep.subr.bf16.mxu1 (!%p195_p2), %v1175_v3  ;;  %v1079_v22 = vpack.c.bf16 (!%p195_p2), %v369_v20, %v368_v19  ;;  %v385_v23 = vld [vmem:[%s1635_s1 + $0x128] sm:$0xff] (!%p195_p2)  ;;  %v352_v24 = vld [vmem:[%s1635_s1 + $0x20] sm:$0xff] (!%p195_p2)  ;;  %v370_v26 = vld [vmem:[%s1635_s1 + $0xb0] sm:$0xff] (!%p195_p2) }
   0xb   : > { %1076 = vmatprep.subr.bf16.mxu0 (!%p195_p2), %v1075_v13  ;;  %v353_v25 = vld [vmem:[%s1635_s1 + $0x28] sm:$0xff] (!%p195_p2)  ;;  %v371_v27 = vld [vmem:[%s1635_s1 + $0xb8] sm:$0xff] (!%p195_p2)  ;;  %v1297_v28 = vpack.c.bf16 (!%p195_p2), %v385_v23, %v384_v21  ;;  %v386_v30 = vld [vmem:[%s1635_s1 + $0x130] sm:$0xff] (!%p195_p2) }
   0xc   : > { %v1081_v29 = vpack.c.bf16 (!%p195_p2), %v353_v25, %v352_v24  ;;  %v1083_v31 = vpack.c.bf16 (!%p195_p2), %v371_v27, %v370_v26  ;;  %v387_v32 = vld [vmem:[%s1635_s1 + $0x138] sm:$0xff] (!%p195_p2)  ;;  %v354_v33 = vld [vmem:[%s1635_s1 + $0x30] sm:$0xff] (!%p195_p2)  ;;  %v372_v35 = vld [vmem:[%s1635_s1 + $0xc0] sm:$0xff] (!%p195_p2) }
   0xd   : > { %s1642_s26 = smov (!%p1249_p3, %s964_s26), 31  ;;  %1148 = vmatpush1.bf16.msra.mxu1 %v1263_v17  ;;  %v355_v34 = vld [vmem:[%s1635_s1 + $0x38] sm:$0xff]  ;;  %v373_v36 = vld [vmem:[%s1635_s1 + $0xc8] sm:$0xff]  ;;  %v1320_v37 = vpack.c.bf16 %v387_v32, %v386_v30  ;;  %v388_v39 = vld [vmem:[%s1635_s1 + $0x140] sm:$0xff]  ;;  %s1644_s19 = smov (!%p244_p4, %s1212_s19), 1 }
   0xe   : > { %1078 = vmatpush3.bf16.msra.mxu0 %v1077_v18  ;;  %1138 = vmatprep.subr.bf16.mxu1 %v1175_v3  ;;  %s990_s30 = sshll.u32 %s1642_s26, 4  ;;  %v1085_v38 = vpack.c.bf16 %v355_v34, %v354_v33  ;;  %v1087_v40 = vpack.c.bf16 %v373_v36, %v372_v35  ;;  %v389_v41 = vld [vmem:[%s1635_s1 + $0x148] sm:$0xff]  ;;  %v356_v42 = vld [vmem:[%s1635_s1 + $0x40] sm:$0xff]  ;;  %v374_v44 = vld [vmem:[%s1635_s1 + $0xd0] sm:$0xff] }
   0xf   : > { %1080 = vmatprep.subr.bf16.mxu0 %v1079_v22  ;;  %v357_v43 = vld [vmem:[%s1635_s1 + $0x48] sm:$0xff]  ;;  %s1338_s17 = scalar_lea.vmem %s1634_s0, %s990_s30  ;;  %v375_v45 = vld [vmem:[%s1635_s1 + $0xd8] sm:$0xff]  ;;  %v1347_v46 = vpack.c.bf16 %v389_v41, %v388_v39  ;;  %v390_v48 = vld [vmem:[%s1635_s1 + $0x150] sm:$0xff] }
  0x10   : > { %v1089_v47 = vpack.c.bf16 %v357_v43, %v356_v42  ;;  %v252_v49 = vld [vmem:[%s1338_s17] sm:$0xff]  ;;  %v1091_v50 = vpack.c.bf16 %v375_v45, %v374_v44  ;;  %v391_v51 = vld [vmem:[%s1635_s1 + $0x158] sm:$0xff]  ;;  %v358_v52 = vld [vmem:[%s1635_s1 + $0x50] sm:$0xff] }
  0x11   : > { %1149 = vmatpush1.bf16.msra.mxu1 %v1297_v28  ;;  %v359_v53 = vld [vmem:[%s1635_s1 + $0x58] sm:$0xff]  ;;  %v285_v54 = vunpack.c.h.bf16 %v252_v49  ;;  %v376_v55 = vld [vmem:[%s1635_s1 + $0xe0] sm:$0xff]  ;;  %v377_v56 = vld [vmem:[%s1635_s1 + $0xe8] sm:$0xff]  ;;  %v1373_v58 = vpack.c.bf16 %v391_v51, %v390_v48  ;;  %v284_v19 = vunpack.c.l.bf16 %v252_v49 }
  0x12   : > { %1082 = vmatpush3.bf16.msra.mxu0 %v1081_v29  ;;  %1139 = vmatprep.subr.bf16.mxu1 %v1175_v3  ;;  %v1370_v57 = vld [vmem:[%s1338_s17 + $0x18] sm:$0xff]  ;;  %v1093_v59 = vpack.c.bf16 %v359_v53, %v358_v52  ;;  %v392_v60 = vld [vmem:[%s1635_s1 + $0x160] sm:$0xff]  ;;  %v1095_v62 = vpack.c.bf16 %v377_v56, %v376_v55  ;;  %v393_v63 = vld [vmem:[%s1635_s1 + $0x168] sm:$0xff] }
  0x13   : > { %1084 = vmatprep.subr.bf16.mxu0 %v1083_v31  ;;  %522 = vmatprep.mubr.f32.mxu0 %v285_v54  ;;  %v291_v61 = vunpack.c.h.bf16 %v1370_v57  ;;  %v360_v0 = vld [vmem:[%s1635_s1 + $0x60] sm:$0xff]  ;;  %v361_v1 = vld [vmem:[%s1635_s1 + $0x68] sm:$0xff]  ;;  %v378_v2 = vld [vmem:[%s1635_s1 + $0xf0] sm:$0xff]  ;;  %v1397_v5 = vpack.c.bf16 %v393_v63, %v392_v60  ;;  %v290_v36 = vunpack.c.l.bf16 %v1370_v57 }
  0x14   : > { %v379_v4 = vld [vmem:[%s1635_s1 + $0xf8] sm:$0xff]  ;;  %v1097_v6 = vpack.c.bf16 %v361_v1, %v360_v0  ;;  %v394_v7 = vld [vmem:[%s1635_s1 + $0x170] sm:$0xff]  ;;  %v396_v15 = vld [vmem:[%s1635_s1 + $0x180] sm:$0xff] }
  0x15   : > { %1150 = vmatpush1.bf16.msra.mxu1 %v1320_v37  ;;  %973 = vmatprep.mubr.msk.f32.mxu1 %vm409_vm0, %v291_v61  ;;  %v1099_v9 = vpack.c.bf16 %v379_v4, %v378_v2  ;;  %v395_v10 = vld [vmem:[%s1635_s1 + $0x178] sm:$0xff]  ;;  %v362_v11 = vld [vmem:[%s1635_s1 + $0x70] sm:$0xff]  ;;  %v397_v16 = vld [vmem:[%s1635_s1 + $0x188] sm:$0xff] }
  0x16   : > { %1086 = vmatpush3.bf16.msra.mxu0 %v1085_v38  ;;  %1140 = vmatprep.subr.bf16.mxu1 %v1175_v3  ;;  %v363_v12 = vld [vmem:[%s1635_s1 + $0x78] sm:$0xff]  ;;  %v1413_v13 = vpack.c.bf16 %v395_v10, %v394_v7  ;;  %v254_v18 = vld [vmem:[%s1338_s17 + $0x10] sm:$0xff]  ;;  %v1424_v20 = vpack.c.bf16 %v397_v16, %v396_v15  ;;  %v256_v24 = vld [vmem:[%s1338_s17 + $0x20] sm:$0xff] }
  0x17   : > { %1088 = vmatprep.subr.bf16.mxu0 %v1087_v40  ;;  %v1101_v14 = vpack.c.bf16 %v363_v12, %v362_v11  ;;  %v289_v21 = vunpack.c.h.bf16 %v254_v18  ;;  %v398_v22 = vld [vmem:[%s1635_s1 + $0x190] sm:$0xff]  ;;  %v399_v23 = vld [vmem:[%s1635_s1 + $0x198] sm:$0xff]  ;;  %v288_v25 = vunpack.c.l.bf16 %v254_v18  ;;  %v293_v27 = vunpack.c.h.bf16 %v256_v24  ;;  %v400_v29 = vld [vmem:[%s1635_s1 + $0x1a0] sm:$0xff] }
  0x18   : > { %v1437_v26 = vpack.c.bf16 %v399_v23, %v398_v22  ;;  %v401_v30 = vld [vmem:[%s1635_s1 + $0x1a8] sm:$0xff]  ;;  %v258_v31 = vld [vmem:[%s1338_s17 + $0x30] sm:$0xff]  ;;  %v260_v35 = vld [vmem:[%s1338_s17 + $0x40] sm:$0xff] }
  0x19   : > { %1151 = vmatpush1.bf16.msra.mxu1 %v1347_v46  ;;  %v1449_v32 = vpack.c.bf16 %v401_v30, %v400_v29  ;;  %v297_v33 = vunpack.c.h.bf16 %v258_v31  ;;  %v257_v34 = vld [vmem:[%s1338_s17 + $0x28] sm:$0xff]  ;;  %v296_v38 = vunpack.c.l.bf16 %v258_v31  ;;  %v301_v40 = vunpack.c.h.bf16 %v260_v35  ;;  %v262_v41 = vld [vmem:[%s1338_s17 + $0x50] sm:$0xff]  ;;  %v264_v48 = vld [vmem:[%s1338_s17 + $0x60] sm:$0xff] }
  0x1a   : > { %1090 = vmatpush3.bf16.msra.mxu0 %v1089_v47  ;;  %1141 = vmatprep.subr.bf16.mxu1 %v1175_v3  ;;  %v295_v39 = vunpack.c.h.bf16 %v257_v34  ;;  %v294_v42 = vunpack.c.l.bf16 %v257_v34  ;;  %v300_v43 = vunpack.c.l.bf16 %v260_v35  ;;  %v305_v45 = vunpack.c.h.bf16 %v262_v41  ;;  %v261_v47 = vld [vmem:[%s1338_s17 + $0x48] sm:$0xff]  ;;  %v263_v52 = vld [vmem:[%s1338_s17 + $0x58] sm:$0xff]  ;;  %v266_v53 = vld [vmem:[%s1338_s17 + $0x70] sm:$0xff] }
  0x1b   : > { %1092 = vmatprep.subr.bf16.mxu0 %v1091_v50  ;;  %v304_v49 = vunpack.c.l.bf16 %v262_v41  ;;  %v303_v50 = vunpack.c.h.bf16 %v261_v47  ;;  %v309_v51 = vunpack.c.h.bf16 %v264_v48  ;;  %v308_v54 = vunpack.c.l.bf16 %v264_v48  ;;  %v265_v57 = vld [vmem:[%s1338_s17 + $0x68] sm:$0xff]  ;;  %v267_v63 = vld [vmem:[%s1338_s17 + $0x78] sm:$0xff]  ;;  %v270_v0 = vld [vmem:[%s1338_s17 + $0x90] sm:$0xff] }
  0x1c   : > { %v307_v55 = vunpack.c.h.bf16 %v263_v52  ;;  %v313_v56 = vunpack.c.h.bf16 %v266_v53  ;;  %v312_v60 = vunpack.c.l.bf16 %v266_v53  ;;  %v311_v61 = vunpack.c.h.bf16 %v265_v57  ;;  %v272_v7 = vld [vmem:[%s1338_s17 + $0xa0] sm:$0xff]  ;;  %v271_v12 = vld [vmem:[%s1338_s17 + $0x98] sm:$0xff]  ;;  %v277_v31 = vld [vmem:[%s1338_s17 + $0xc8] sm:$0xff] }
  0x1d   : > { %1152 = vmatpush1.bf16.msra.mxu1 %v1373_v58  ;;  %v315_v2 = vunpack.c.h.bf16 %v267_v63  ;;  %v321_v4 = vunpack.c.h.bf16 %v270_v0  ;;  %v325_v11 = vunpack.c.h.bf16 %v272_v7  ;;  %v324_v15 = vunpack.c.l.bf16 %v272_v7 }
  0x1e   : > { %1094 = vmatpush3.bf16.msra.mxu0 %v1093_v59  ;;  %1142 = vmatprep.subr.bf16.mxu1 %v1175_v3  ;;  %v268_v59 = vld [vmem:[%s1338_s17 + $0x80] sm:$0xff]  ;;  %v323_v16 = vunpack.c.h.bf16 %v271_v12 }
  0x1f   : > { %1096 = vmatprep.subr.bf16.mxu0 %v1095_v62  ;;  %v317_v62 = vunpack.c.h.bf16 %v268_v59  ;;  %v316_v1 = vunpack.c.l.bf16 %v268_v59 }
  0x21   : > { %1153 = vmatpush1.bf16.msra.mxu1 %v1397_v5 }
  0x22   : > { %1098 = vmatpush3.bf16.msra.mxu0 %v1097_v6  ;;  %1143 = vmatprep.subr.bf16.mxu1 %v1175_v3  ;;  %v269_v6 = vld [vmem:[%s1338_s17 + $0x88] sm:$0xff] }
  0x23   : > { %1100 = vmatprep.subr.bf16.mxu0 %v1099_v9  ;;  %v320_v9 = vunpack.c.l.bf16 %v270_v0  ;;  %v319_v10 = vunpack.c.h.bf16 %v269_v6 }
  0x25   : > { %1154 = vmatpush1.bf16.msra.mxu1 %v1413_v13 }
  0x26   : > { %1102 = vmatpush3.bf16.msra.mxu0 %v1101_v14  ;;  %1144 = vmatprep.subr.bf16.mxu1 %v1175_v3  ;;  %v274_v14 = vld [vmem:[%s1338_s17 + $0xb0] sm:$0xff] }
  0x27   : > { %1103 = vmatprep.subr.bf16.mxu0 %v1175_v3  ;;  %v329_v18 = vunpack.c.h.bf16 %v274_v14  ;;  %v328_v22 = vunpack.c.l.bf16 %v274_v14 }
  0x29   : > { %523 = vmatmul.mubr.f32.vlgmr.msra.gmra.mrb[0].mxu0 %v284_v19  ;;  %1155 = vmatpush1.bf16.msra.mxu1 %v1424_v20  ;;  %v273_v19 = vld [vmem:[%s1338_s17 + $0xa8] sm:$0xff] }
  0x2a   : > { %1105 = vmatpush1.bf16.msra.mxu0 %v1236_v8  ;;  %527 = vmatprep.mubr.f32.mxu0 %v289_v21  ;;  %v292_v8 = vunpack.c.l.bf16 %v256_v24  ;;  %v276_v21 = vld [vmem:[%s1338_s17 + $0xc0] sm:$0xff]  ;;  %v327_v23 = vunpack.c.h.bf16 %v273_v19 }
  0x2b   : > { %1145 = vmatprep.subr.bf16.mxu1 %v1175_v3  ;;  %1106 = vmatprep.subr.bf16.mxu0 %v1175_v3  ;;  %v333_v24 = vunpack.c.h.bf16 %v276_v21 }
  0x2d   : > { %528 = vmatmul.mubr.f32.gmra.mrb[2].mxu0 %v288_v25  ;;  %1156 = vmatpush1.bf16.msra.mxu1 %v1437_v26  ;;  %v275_v25 = vld [vmem:[%s1338_s17 + $0xb8] sm:$0xff] }
  0x2e   : > { %532 = vmatprep.mubr.f32.mxu0 %v293_v27  ;;  %1108 = vmatpush1.bf16.msra.mxu0 %v1263_v17  ;;  %v259_v17 = vld [vmem:[%s1338_s17 + $0x38] sm:$0xff]  ;;  %v278_v27 = vld [vmem:[%s1338_s17 + $0xd0] sm:$0xff]  ;;  %v331_v29 = vunpack.c.h.bf16 %v275_v25 }
  0x2f   : > { %1146 = vmatprep.subr.bf16.mxu1 %v1175_v3  ;;  %1109 = vmatprep.subr.bf16.mxu0 %v1175_v3  ;;  %v299_v44 = vunpack.c.h.bf16 %v259_v17  ;;  %v337_v30 = vunpack.c.h.bf16 %v278_v27  ;;  %v336_v34 = vunpack.c.l.bf16 %v278_v27 }
  0x31   : > { %533 = vmatmul.mubr.f32.gmra.mrb[4].mxu0 %v292_v8  ;;  %1157 = vmatpush1.bf16.msra.mxu1 %v1449_v32  ;;  %v280_v8 = vld [vmem:[%s1338_s17 + $0xe0] sm:$0xff] }
  0x32   : > { %537 = vmatprep.mubr.f32.mxu0 %v297_v33  ;;  %1111 = vmatpush1.bf16.msra.mxu0 %v1297_v28  ;;  %v298_v28 = vunpack.c.l.bf16 %v259_v17  ;;  %v330_v33 = vunpack.c.l.bf16 %v275_v25  ;;  %v341_v35 = vunpack.c.h.bf16 %v280_v8 }
  0x33   : > { %1112 = vmatprep.subr.bf16.mxu0 %v1175_v3 }
  0x34   : > { %673 = vmatmul.mubr.f32.vlgmr.msra.gmra.mrb[0].mxu1 %v290_v36  ;;  %v279_v36 = vld [vmem:[%s1338_s17 + $0xd8] sm:$0xff] }
  0x35   : > { %538 = vmatmul.mubr.f32.gmra.mrb[6].mxu0 %v296_v38  ;;  %974 = vmatprep.mubr.msk.f32.mxu1 %vm409_vm0, %v295_v39  ;;  %v282_v38 = vld [vmem:[%s1338_s17 + $0xf0] sm:$0xff]  ;;  %v334_v39 = vunpack.c.l.bf16 %v277_v31  ;;  %v339_v17 = vunpack.c.h.bf16 %v279_v36 }
  0x36   : > { %542 = vmatprep.mubr.f32.mxu0 %v301_v40  ;;  %1114 = vmatpush1.bf16.msra.mxu0 %v1320_v37  ;;  %v302_v37 = vunpack.c.l.bf16 %v261_v47  ;;  %v340_v40 = vunpack.c.l.bf16 %v280_v8  ;;  %v345_v41 = vunpack.c.h.bf16 %v282_v38 }
  0x37   : > { %1115 = vmatprep.subr.bf16.mxu0 %v1175_v3 }
  0x38   : > { %678 = vmatmul.mubr.f32.gmra.mrb[2].mxu1 %v294_v42  ;;  %v281_v42 = vld [vmem:[%s1338_s17 + $0xe8] sm:$0xff] }
  0x39   : > { %543 = vmatmul.mubr.f32.gmra.mrb[8].mxu0 %v300_v43  ;;  %975 = vmatprep.mubr.msk.f32.mxu1 %vm409_vm0, %v299_v44  ;;  %v253_v43 = vld [vmem:[%s1338_s17 + $0x8] sm:$0xff]  ;;  %v338_v44 = vunpack.c.l.bf16 %v279_v36  ;;  %v343_v47 = vunpack.c.h.bf16 %v281_v42 }
  0x3a   : > { %547 = vmatprep.mubr.f32.mxu0 %v305_v45  ;;  %1117 = vmatpush1.bf16.msra.mxu0 %v1347_v46  ;;  %v306_v46 = vunpack.c.l.bf16 %v263_v52  ;;  %v344_v45 = vunpack.c.l.bf16 %v282_v38  ;;  %v287_v48 = vunpack.c.h.bf16 %v253_v43 }
  0x3b   : > { %1118 = vmatprep.subr.bf16.mxu0 %v1175_v3 }
  0x3c   : > { %683 = vmatmul.mubr.f32.gmra.mrb[4].mxu1 %v298_v28  ;;  %v283_v28 = vld [vmem:[%s1338_s17 + $0xf8] sm:$0xff]  ;;  %s968_s17 = sshll.u32 %s1642_s26, 3  ;;  %s969_s26 = sshll.u32 %s1644_s19, 3 }
  0x3d   : > { %548 = vmatmul.mubr.f32.gmra.mrb[10].mxu0 %v304_v49  ;;  %976 = vmatprep.mubr.msk.f32.mxu1 %vm409_vm0, %v303_v50  ;;  %v286_v49 = vunpack.c.l.bf16 %v253_v43  ;;  %v342_v50 = vunpack.c.l.bf16 %v281_v42  ;;  %v346_v52 = vunpack.c.l.bf16 %v283_v28  ;;  %s1527_s30 = scalar_lea.vmem %s1637_s3, %s968_s17  ;;  %s247_s8 = scalar_lea.vmem %s1638_s4, %s969_s26 }
  0x3e   : > { %552 = vmatprep.mubr.f32.mxu0 %v309_v51  ;;  %1120 = vmatpush1.bf16.msra.mxu0 %v1373_v58  ;;  %v310_v58 = vunpack.c.l.bf16 %v265_v57  ;;  %v347_v51 = vunpack.c.h.bf16 %v283_v28  ;;  %s251_s11 = scalar_lea.vmem %s1639_s5, %s969_s26 }
  0x3f   : > { %1121 = vmatprep.subr.bf16.mxu0 %v1175_v3 }
  0x40   : > { %688 = vmatmul.mubr.f32.gmra.mrb[6].mxu1 %v302_v37 }
  0x41   : > { %553 = vmatmul.mubr.f32.gmra.mrb[12].mxu0 %v308_v54  ;;  %977 = vmatprep.mubr.msk.f32.mxu1 %vm409_vm0, %v307_v55 }
  0x42   : > { %557 = vmatprep.mubr.f32.mxu0 %v313_v56  ;;  %1123 = vmatpush1.bf16.msra.mxu0 %v1397_v5  ;;  %v314_v5 = vunpack.c.l.bf16 %v267_v63 }
  0x43   : > { %1124 = vmatprep.subr.bf16.mxu0 %v1175_v3 }
  0x44   : > { %693 = vmatmul.mubr.f32.gmra.mrb[8].mxu1 %v306_v46 }
  0x45   : > { %558 = vmatmul.mubr.f32.gmra.mrb[14].mxu0 %v312_v60  ;;  %978 = vmatprep.mubr.msk.f32.mxu1 %vm409_vm0, %v311_v61  ;;  %v1521_v61 = vld [vmem:[%s1636_s2] ss:$0 sm:$0xff] }
  0x46   : > { %562 = vmatprep.mubr.f32.mxu0 %v317_v62  ;;  %1126 = vmatpush1.bf16.msra.mxu0 %v1413_v13  ;;  %v318_v13 = vunpack.c.l.bf16 %v269_v6 }
  0x47   : > { %1127 = vmatprep.subr.bf16.mxu0 %v1175_v3 }
  0x48   : > { %698 = vmatmul.mubr.f32.gmra.mrb[10].mxu1 %v310_v58 }
  0x49   : > { %563 = vmatmul.mubr.f32.gmra.mrb[16].mxu0 %v316_v1  ;;  %979 = vmatprep.mubr.msk.f32.mxu1 %vm409_vm0, %v315_v2 }
  0x4a   : > { %567 = vmatprep.mubr.f32.mxu0 %v321_v4  ;;  %1129 = vmatpush1.bf16.msra.mxu0 %v1424_v20  ;;  %v322_v20 = vunpack.c.l.bf16 %v271_v12 }
  0x4b   : > { %1130 = vmatprep.subr.bf16.mxu0 %v1175_v3 }
  0x4c   : > { %703 = vmatmul.mubr.f32.gmra.mrb[12].mxu1 %v314_v5 }
  0x4d   : > { %568 = vmatmul.mubr.f32.gmra.mrb[18].mxu0 %v320_v9  ;;  %980 = vmatprep.mubr.msk.f32.mxu1 %vm409_vm0, %v319_v10 }
  0x4e   : > { %572 = vmatprep.mubr.f32.mxu0 %v325_v11  ;;  %1132 = vmatpush1.bf16.msra.mxu0 %v1437_v26  ;;  %v326_v26 = vunpack.c.l.bf16 %v273_v19 }
  0x4f   : > { %1133 = vmatprep.subr.bf16.mxu0 %v1175_v3  ;;  %v332_v3 = vunpack.c.l.bf16 %v276_v21 }
  0x50   : > { %708 = vmatmul.mubr.f32.gmra.mrb[14].mxu1 %v318_v13 }
  0x51   : > { %573 = vmatmul.mubr.f32.gmra.mrb[20].mxu0 %v324_v15  ;;  %981 = vmatprep.mubr.msk.f32.mxu1 %vm409_vm0, %v323_v16 }
  0x52   : > { %577 = vmatprep.mubr.f32.mxu0 %v329_v18  ;;  %1135 = vmatpush1.bf16.msra.mxu0 %v1449_v32  ;;  %v335_v32 = vunpack.c.h.bf16 %v277_v31 }
  0x54   : > { %713 = vmatmul.mubr.f32.gmra.mrb[16].mxu1 %v322_v20 }
  0x55   : > { %578 = vmatmul.mubr.f32.gmra.mrb[22].mxu0 %v328_v22  ;;  %982 = vmatprep.mubr.msk.f32.mxu1 %vm409_vm0, %v327_v23 }
  0x56   : > { %582 = vmatprep.mubr.f32.mxu0 %v333_v24 }
  0x58   : > { %718 = vmatmul.mubr.f32.gmra.mrb[18].mxu1 %v326_v26 }
  0x59   : > { %583 = vmatmul.mubr.f32.gmra.mrb[24].mxu0 %v332_v3  ;;  %983 = vmatprep.mubr.msk.f32.mxu1 %vm409_vm0, %v331_v29 }
  0x5a   : > { %587 = vmatprep.mubr.f32.mxu0 %v337_v30 }
  0x5c   : > { %723 = vmatmul.mubr.f32.gmra.mrb[20].mxu1 %v330_v33 }
  0x5d   : > { %588 = vmatmul.mubr.f32.gmra.mrb[26].mxu0 %v336_v34  ;;  %984 = vmatprep.mubr.msk.f32.mxu1 %vm409_vm0, %v335_v32 }
  0x5e   : > { %592 = vmatprep.mubr.f32.mxu0 %v341_v35 }
  0x60   : > { %728 = vmatmul.mubr.f32.gmra.mrb[22].mxu1 %v334_v39 }
  0x61   : > { %593 = vmatmul.mubr.f32.gmra.mrb[28].mxu0 %v340_v40  ;;  %985 = vmatprep.mubr.msk.f32.mxu1 %vm409_vm0, %v339_v17 }
  0x62   : > { %597 = vmatprep.mubr.f32.mxu0 %v345_v41 }
  0x64   : > { %733 = vmatmul.mubr.f32.gmra.mrb[24].mxu1 %v338_v44 }
  0x65   : > { %598 = vmatmul.mubr.f32.gmra.mrb[30].mxu0 %v344_v45  ;;  %986 = vmatprep.mubr.msk.f32.mxu1 %vm409_vm0, %v343_v47 }
  0x66   : > { %972 = vmatprep.mubr.msk.f32.mxu0 %vm409_vm0, %v287_v48 }
  0x68   : > { %738 = vmatmul.mubr.f32.gmra.mrb[26].mxu1 %v342_v50 }
  0x69   : > { %668 = vmatmul.mubr.f32.vlgmr.msra.gmra.mrb[32].mxu0 %v286_v49  ;;  %987 = vmatprep.mubr.msk.f32.mxu1 %vm409_vm0, %v347_v51 }
  0x6c   : > { %743 = vmatmul.mubr.f32.gmra.mrb[28].mxu1 %v346_v52 }
  0xfc   : > { %v1023_v53 = vpop.f32.mrb[0].mxu0 }
  0xfd   : > { %v1024_v37 = vpop.f32.mrb[1].mxu0 }
  0xfe   : > { %v1515_v54 = vadd.f32 %v1024_v37, %v1023_v53 }
 0x100   : > { %v1026_v55 = vpop.f32.mrb[2].mxu0 }
 0x101   : > { %v1027_v56 = vpop.f32.mrb[3].mxu0 }
 0x102   : > { %v1028_v57 = vadd.f32 %v1027_v56, %v1026_v55 }
 0x104   : > { %v1029_v59 = vpop.f32.mrb[4].mxu0  ;;  %v530_v62 = vadd.f32 %v1028_v57, %v1521_v61 }
 0x105   : > { %v1030_v46 = vpop.f32.mrb[5].mxu0 }
 0x106   : > { %v1031_v60 = vadd.f32 %v1030_v46, %v1029_v59 }
 0x107   : > { %v674_v63 = vpop.f32.mrb[0].mxu1 }
 0x108   : > { %v1032_v0 = vpop.f32.mrb[6].mxu0  ;;  %v1529_v58 = vadd.f32 %v674_v63, %v530_v62  ;;  %v676_v2 = vpop.f32.mrb[1].mxu1  ;;  %v535_v6 = vadd.f32 %v1031_v60, %v1521_v61 }
 0x109   : > { %v1033_v1 = vpop.f32.mrb[7].mxu0 }
 0x10a   : > { %v1034_v4 = vadd.f32 %v1033_v1, %v1032_v0  ;;  %749 = vst [vmem:[%s1527_s30 + $0x8] sm:$0xff] %v1529_v58 }
 0x10b   : > { %v679_v7 = vpop.f32.mrb[2].mxu1 }
 0x10c   : > { %v1035_v5 = vpop.f32.mrb[8].mxu0  ;;  %v1534_v9 = vadd.f32 %v679_v7, %v535_v6  ;;  %v681_v11 = vpop.f32.mrb[3].mxu1  ;;  %v540_v14 = vadd.f32 %v1034_v4, %v1521_v61 }
 0x10d   : > { %v1036_v10 = vpop.f32.mrb[9].mxu0 }
 0x10e   : > { %v1037_v12 = vadd.f32 %v1036_v10, %v1035_v5  ;;  %750 = vst [vmem:[%s1527_s30 + $0x10] sm:$0xff] %v1534_v9 }
 0x10f   : > { %v684_v13 = vpop.f32.mrb[4].mxu1 }
 0x110   : > { %v1038_v15 = vpop.f32.mrb[10].mxu0  ;;  %v1539_v16 = vadd.f32 %v684_v13, %v540_v14  ;;  %v686_v19 = vpop.f32.mrb[5].mxu1  ;;  %v545_v20 = vadd.f32 %v1037_v12, %v1521_v61 }
 0x111   : > { %v1039_v18 = vpop.f32.mrb[11].mxu0 }
 0x112   : > { %v1040_v21 = vadd.f32 %v1039_v18, %v1038_v15  ;;  %751 = vst [vmem:[%s1527_s30 + $0x18] sm:$0xff] %v1539_v16 }
 0x113   : > { %v689_v22 = vpop.f32.mrb[6].mxu1 }
 0x114   : > { %v1041_v23 = vpop.f32.mrb[12].mxu0  ;;  %v1544_v24 = vadd.f32 %v689_v22, %v545_v20  ;;  %v691_v27 = vpop.f32.mrb[7].mxu1  ;;  %v550_v3 = vadd.f32 %v1040_v21, %v1521_v61 }
 0x115   : > { %v1042_v25 = vpop.f32.mrb[13].mxu0 }
 0x116   : > { %v1043_v26 = vadd.f32 %v1042_v25, %v1041_v23  ;;  %752 = vst [vmem:[%s1527_s30 + $0x20] sm:$0xff] %v1544_v24 }
 0x117   : > { %v694_v29 = vpop.f32.mrb[8].mxu1 }
 0x118   : > { %v1044_v30 = vpop.f32.mrb[14].mxu0  ;;  %v1549_v31 = vadd.f32 %v694_v29, %v550_v3  ;;  %v696_v33 = vpop.f32.mrb[9].mxu1  ;;  %v555_v32 = vadd.f32 %v1043_v26, %v1521_v61 }
 0x119   : > { %v1045_v8 = vpop.f32.mrb[15].mxu0 }
 0x11a   : > { %v1046_v34 = vadd.f32 %v1045_v8, %v1044_v30  ;;  %753 = vst [vmem:[%s1527_s30 + $0x28] sm:$0xff] %v1549_v31 }
 0x11b   : > { %v699_v35 = vpop.f32.mrb[10].mxu1 }
 0x11c   : > { %v1047_v36 = vpop.f32.mrb[16].mxu0  ;;  %v1554_v38 = vadd.f32 %v699_v35, %v555_v32  ;;  %v701_v40 = vpop.f32.mrb[11].mxu1  ;;  %v560_v41 = vadd.f32 %v1046_v34, %v1521_v61  ;;  %v525_v32 = vadd.f32 %v1515_v54, %v1521_v61 }
 0x11d   : > { %v1048_v39 = vpop.f32.mrb[17].mxu0 }
 0x11e   : > { %v1049_v17 = vadd.f32 %v1048_v39, %v1047_v36  ;;  %754 = vst [vmem:[%s1527_s30 + $0x30] sm:$0xff] %v1554_v38 }
 0x11f   : > { %v704_v42 = vpop.f32.mrb[12].mxu1 }
 0x120   : > { %v1050_v43 = vpop.f32.mrb[18].mxu0  ;;  %v1559_v44 = vadd.f32 %v704_v42, %v560_v41  ;;  %v706_v47 = vpop.f32.mrb[13].mxu1  ;;  %v565_v28 = vadd.f32 %v1049_v17, %v1521_v61 }
 0x121   : > { %v1051_v45 = vpop.f32.mrb[19].mxu0 }
 0x122   : > { %v1052_v48 = vadd.f32 %v1051_v45, %v1050_v43  ;;  %755 = vst [vmem:[%s1527_s30 + $0x38] sm:$0xff] %v1559_v44 }
 0x123   : > { %v709_v49 = vpop.f32.mrb[14].mxu1 }
 0x124   : > { %v1053_v50 = vpop.f32.mrb[20].mxu0  ;;  %v1564_v51 = vadd.f32 %v709_v49, %v565_v28  ;;  %v711_v53 = vpop.f32.mrb[15].mxu1  ;;  %v570_v55 = vadd.f32 %v1052_v48, %v1521_v61 }
 0x125   : > { %v1054_v52 = vpop.f32.mrb[21].mxu0 }
 0x126   : > { %v1055_v37 = vadd.f32 %v1054_v52, %v1053_v50  ;;  %756 = vst [vmem:[%s1527_s30 + $0x40] sm:$0xff] %v1564_v51 }
 0x127   : > { %v714_v56 = vpop.f32.mrb[16].mxu1 }
 0x128   : > { %v1056_v57 = vpop.f32.mrb[22].mxu0  ;;  %v1569_v59 = vadd.f32 %v714_v56, %v570_v55  ;;  %v716_v60 = vpop.f32.mrb[17].mxu1  ;;  %v575_v63 = vadd.f32 %v1055_v37, %v1521_v61 }
 0x129   : > { %v1057_v46 = vpop.f32.mrb[23].mxu0 }
 0x12a   : > { %v1058_v62 = vadd.f32 %v1057_v46, %v1056_v57  ;;  %757 = vst [vmem:[%s1527_s30 + $0x48] sm:$0xff] %v1569_v59 }
 0x12b   : > { %v719_v0 = vpop.f32.mrb[18].mxu1 }
 0x12c   : > { %v1059_v1 = vpop.f32.mrb[24].mxu0  ;;  %v1574_v2 = vadd.f32 %v719_v0, %v575_v63  ;;  %v721_v6 = vpop.f32.mrb[19].mxu1  ;;  %v580_v5 = vadd.f32 %v1058_v62, %v1521_v61 }
 0x12d   : > { %v1060_v4 = vpop.f32.mrb[25].mxu0 }
 0x12e   : > { %v1061_v7 = vadd.f32 %v1060_v4, %v1059_v1  ;;  %758 = vst [vmem:[%s1527_s30 + $0x50] sm:$0xff] %v1574_v2 }
 0x12f   : > { %v724_v10 = vpop.f32.mrb[20].mxu1 }
 0x130   : > { %v1062_v11 = vpop.f32.mrb[26].mxu0  ;;  %v1579_v12 = vadd.f32 %v724_v10, %v580_v5  ;;  %v726_v13 = vpop.f32.mrb[21].mxu1  ;;  %v585_v18 = vadd.f32 %v1061_v7, %v1521_v61 }
 0x131   : > { %v1063_v14 = vpop.f32.mrb[27].mxu0 }
 0x132   : > { %v1064_v15 = vadd.f32 %v1063_v14, %v1062_v11  ;;  %759 = vst [vmem:[%s1527_s30 + $0x58] sm:$0xff] %v1579_v12 }
 0x133   : > { %v729_v19 = vpop.f32.mrb[22].mxu1 }
 0x134   : > { %v1065_v21 = vpop.f32.mrb[28].mxu0  ;;  %v730_v20 = vadd.f32 %v729_v19, %v585_v18  ;;  %v731_v23 = vpop.f32.mrb[23].mxu1  ;;  %v590_v27 = vadd.f32 %v1064_v15, %v1521_v61 }
 0x135   : > { %v1066_v22 = vpop.f32.mrb[29].mxu0 }
 0x136   : > { %v1067_v25 = vadd.f32 %v1066_v22, %v1065_v21  ;;  %760 = vst [vmem:[%s1527_s30 + $0x60] sm:$0xff] %v730_v20 }
 0x137   : > { %v734_v26 = vpop.f32.mrb[24].mxu1 }
 0x138   : > { %v1068_v3 = vpop.f32.mrb[30].mxu0  ;;  %v735_v29 = vadd.f32 %v734_v26, %v590_v27  ;;  %v736_v8 = vpop.f32.mrb[25].mxu1  ;;  %v595_v34 = vadd.f32 %v1067_v25, %v1521_v61 }
 0x139   : > { %v1069_v30 = vpop.f32.mrb[31].mxu0 }
 0x13a   : > { %v1070_v33 = vadd.f32 %v1069_v30, %v1068_v3  ;;  %761 = vst [vmem:[%s1527_s30 + $0x68] sm:$0xff] %v735_v29 }
 0x13b   : > { %v739_v35 = vpop.f32.mrb[26].mxu1 }
 0x13c   : > { %v669_v36 = vpop.f32.mrb[32].mxu0  ;;  %v740_v39 = vadd.f32 %v739_v35, %v595_v34  ;;  %v741_v41 = vpop.f32.mrb[27].mxu1  ;;  %v600_v43 = vadd.f32 %v1070_v33, %v1521_v61 }
 0x13d   : > { %v670_v40 = vadd.f32 %v669_v36, %v525_v32  ;;  %v671_v17 = vpop.f32.mrb[33].mxu0 }
 0x13e   : > { %762 = vst [vmem:[%s1527_s30 + $0x70] sm:$0xff] %v740_v39 }
 0x13f   : > { %748 = vst [vmem:[%s1527_s30] sm:$0xff] %v670_v40  ;;  %v764_v42 = vadd.f32 %v1529_v58, %v670_v40  ;;  %v744_v45 = vpop.f32.mrb[28].mxu1 }
 0x140   : > { %v745_v48 = vadd.f32 %v744_v45, %v600_v43  ;;  %v746_v28 = vpop.f32.mrb[29].mxu1 }
 0x141   : > { %v765_v47 = vadd.f32 %v764_v42, %v1534_v9 }
 0x142   : > { %763 = vst [vmem:[%s1527_s30 + $0x78] sm:$0xff] %v745_v48 }
 0x143   : > { %v766_v54 = vadd.f32 %v765_v47, %v1539_v16 }
 0x145   : > { %v767_v49 = vadd.f32 %v766_v54, %v1544_v24 }
 0x147   : > { %v768_v50 = vadd.f32 %v767_v49, %v1549_v31 }
 0x149   : > { %v769_v52 = vadd.f32 %v768_v50, %v1554_v38 }
 0x14b   : > { %v770_v53 = vadd.f32 %v769_v52, %v1559_v44 }
 0x14d   : > { %v771_v61 = vadd.f32 %v770_v53, %v1564_v51 }
 0x14f   : > { %v772_v37 = vadd.f32 %v771_v61, %v1569_v59 }
 0x151   : > { %v773_v55 = vadd.f32 %v772_v37, %v1574_v2 }
 0x153   : > { %v774_v56 = vadd.f32 %v773_v55, %v1579_v12 }
 0x155   : > { %v775_v57 = vadd.f32 %v774_v56, %v730_v20 }
 0x157   : > { %v776_v46 = vadd.f32 %v775_v57, %v735_v29 }
 0x159   : > { %v777_v60 = vadd.f32 %v776_v46, %v740_v39 }
 0x15b   : > { %v778_v62 = vadd.f32 %v777_v60, %v745_v48 }
 0x15d   : > { %v779_v63 = vrot.slane %v778_v62, 4 }
 0x15f   : > { %v780_v0 = vadd.f32 %v779_v63, %v778_v62 }
 0x161   : > { %v781_v1 = vrot.slane %v780_v0, 2 }
 0x163   : > { %v782_v4 = vadd.f32 %v781_v1, %v780_v0 }
 0x165   : > { %v783_v6 = vrot.slane %v782_v4, 1 }
 0x167   : > { %v784_v7 = vadd.f32 %v783_v6, %v782_v4 }
 0x169   : > { %v785_v5 = vmul.f32 0.0078125, %v784_v7  ;;  %839 = vst [vmem:[%s247_s8] sm:$0xff] %v784_v7 }
 0x16b   : > { %v786_v10 = vsub.f32 %v670_v40, %v785_v5  ;;  %v787_v11 = vsub.f32 %v1529_v58, %v785_v5  ;;  %v796_v14 = vsub.f32 %v1574_v2, %v785_v5  ;;  %v797_v13 = vsub.f32 %v1579_v12, %v785_v5 }
 0x16c   : > { %v798_v15 = vsub.f32 %v730_v20, %v785_v5  ;;  %v799_v18 = vsub.f32 %v735_v29, %v785_v5  ;;  %v800_v19 = vsub.f32 %v740_v39, %v785_v5  ;;  %v801_v21 = vsub.f32 %v745_v48, %v785_v5 }
 0x16d   : > { %v788_v22 = vsub.f32 %v1534_v9, %v785_v5  ;;  %v802_v23 = vmul.f32 %v786_v10, %v786_v10  ;;  %v803_v25 = vmul.f32 %v787_v11, %v787_v11  ;;  %v789_v27 = vsub.f32 %v1539_v16, %v785_v5 }
 0x16e   : > { %v790_v26 = vsub.f32 %v1544_v24, %v785_v5  ;;  %v791_v58 = vsub.f32 %v1549_v31, %v785_v5  ;;  %v792_v12 = vsub.f32 %v1554_v38, %v785_v5  ;;  %v793_v33 = vsub.f32 %v1559_v44, %v785_v5 }
 0x16f   : > { %v804_v3 = vmul.f32 %v788_v22, %v788_v22  ;;  %v818_v30 = vadd.f32 %v803_v25, %v802_v23  ;;  %v805_v8 = vmul.f32 %v789_v27, %v789_v27  ;;  %v794_v32 = vsub.f32 %v1564_v51, %v785_v5 }
 0x170   : > { %v806_v20 = vmul.f32 %v790_v26, %v790_v26  ;;  %v807_v34 = vmul.f32 %v791_v58, %v791_v58  ;;  %v808_v35 = vmul.f32 %v792_v12, %v792_v12  ;;  %v795_v24 = vsub.f32 %v1569_v59, %v785_v5 }
 0x171   : > { %v819_v2 = vadd.f32 %v818_v30, %v804_v3  ;;  %v809_v36 = vmul.f32 %v793_v33, %v793_v33  ;;  %v810_v40 = vmul.f32 %v794_v32, %v794_v32  ;;  %v812_v42 = vmul.f32 %v796_v14, %v796_v14 }
 0x172   : > { %v811_v17 = vmul.f32 %v795_v24, %v795_v24  ;;  %v813_v43 = vmul.f32 %v797_v13, %v797_v13  ;;  %v814_v44 = vmul.f32 %v798_v15, %v798_v15  ;;  %v815_v48 = vmul.f32 %v799_v18, %v799_v18 }
 0x173   : > { %v820_v29 = vadd.f32 %v819_v2, %v805_v8  ;;  %v816_v51 = vmul.f32 %v800_v19, %v800_v19  ;;  %v817_v49 = vmul.f32 %v801_v21, %v801_v21 }
 0x175   : > { %v821_v9 = vadd.f32 %v820_v29, %v806_v20 }
 0x177   : > { %v822_v16 = vadd.f32 %v821_v9, %v807_v34 }
 0x179   : > { %v823_v39 = vadd.f32 %v822_v16, %v808_v35 }
 0x17b   : > { %v824_v31 = vadd.f32 %v823_v39, %v809_v36 }
 0x17d   : > { %v825_v41 = vadd.f32 %v824_v31, %v810_v40 }
 0x17f   : > { %v826_v38 = vadd.f32 %v825_v41, %v811_v17 }
 0x181   : > { %v827_v45 = vadd.f32 %v826_v38, %v812_v42 }
 0x183   : > { %v828_v47 = vadd.f32 %v827_v45, %v813_v43 }
 0x185   : > { %v829_v28 = vadd.f32 %v828_v47, %v814_v44 }
 0x187   : > { %v830_v54 = vadd.f32 %v829_v28, %v815_v48 }
 0x189   : > { %v831_v50 = vadd.f32 %v830_v54, %v816_v51 }
 0x18b   : > { %v832_v59 = vadd.f32 %v831_v50, %v817_v49 }
 0x18d   : > { %v833_v52 = vrot.slane %v832_v59, 4 }
 0x18f   : > { %v834_v53 = vadd.f32 %v833_v52, %v832_v59 }
 0x191   : > { %v835_v61 = vrot.slane %v834_v53, 2 }
 0x193   : > { %v836_v37 = vadd.f32 %v835_v61, %v834_v53 }
 0x195   : > { %v837_v55 = vrot.slane %v836_v37, 1 }
 0x197   : > { %v838_v56 = vadd.f32 %v837_v55, %v836_v37 }
 0x199   : > { %840 = vst [vmem:[%s251_s11] sm:$0xff] %v838_v56 }
 0x19a PF: > { %s16_s18 = sadd.s32 1, %s1173_s18  }
 0x19b   : > { %p13_p5 = scmp.ge.s32.totalorder %s16_s18, 4  }
 0x19d   :  { %15 = sbr.rel (!%p13_p5) target bundleno = 1 (0x1), region = 86 }

// kernel: tile.28
= control target key start
LH: loop header
LB: loop body
LE: loop exit
PB: predicated region body
PF: predicated region fallthrough
CT: control target
= control target key end

     0   :  { %s40_s0 = inlined_call_operand.vmem [shape: f32[16], index: 0, kind: input, shape index: {}]   ;;  %s41_s1 = inlined_call_operand.vmem [shape: f32[32,16], index: 1, kind: output, shape index: {}]  }
   0x1   :  { %v4_v0 = vld [vmem:[%s40_s0] ss:$0 sm:$0xff] }
   0x2   :  { %5 = vst [vmem:[%s41_s1] sm:$0xff] %v4_v0  ;;  %12 = vst [vmem:[%s41_s1 + $0x8] sm:$0xff] %v4_v0 }
   0x3   :  { %13 = vst [vmem:[%s41_s1 + $0x10] sm:$0xff] %v4_v0  ;;  %14 = vst [vmem:[%s41_s1 + $0x18] sm:$0xff] %v4_v0 }

// kernel: tile.29
= control target key start
LH: loop header
LB: loop body
LE: loop exit
PB: predicated region body
PF: predicated region fallthrough
CT: control target
= control target key end

     0   :  { %s89_s8 = smov 112   ;;  %s90_s11 = smov 80   ;;  %vm3_vm0 = vcmask 130048   ;;  %vm9_vm1 = vcmask 1048448   ;;  %vm15_vm2 = vcmask 917248   ;;  %vm21_vm3 = vcmask 786048   ;;  %s142_s0 = inlined_call_operand.vmem [shape: f32[32,16], index: 0, kind: input, shape index: {}]   ;;  %s143_s1 = inlined_call_operand.vmem [shape: f32[1,512], index: 1, kind: output, shape index: {}]  }
   0x1   :  { %v72_v0 = vld [vmem:[%s142_s0 + $0x7] ss:$8 sm:$0xf]   ;;  %v74_v1 = vld [vmem:[%s142_s0 + $0x5] ss:$8 sm:$0xf]  }
   0x2   :  { %7 = vrot.lane.b32.xlu0 %v72_v0, %s89_s8  ;;  %19 = vrot.lane.b32.xlu1 %v74_v1, %s90_s11  ;;  %v73_v2 = vld [vmem:[%s142_s0 + $0x6] ss:$8 sm:$0xf]   ;;  %v75_v3 = vld [vmem:[%s142_s0 + $0x4] ss:$8 sm:$0xf]  }
   0x3   :  { %s91_s16 = smov 96   ;;  %v2_v4 = vld [vmem:[%s142_s0] ss:$8 sm:$0xf]   ;;  %s92_s19 = smov 64   ;;  %vm27_vm4 = vcmask 654848  }
   0x4   :  { %v76_v5 = vld [vmem:[%s142_s0 + $0x3] ss:$8 sm:$0xf]   ;;  %4 = vst.msk [vmem:[#allocation0] ss:$8 sm:$0xf] %vm3_vm0, %v2_v4  }
   0x5   :  { %v77_v6 = vld [vmem:[%s142_s0 + $0x2] ss:$8 sm:$0xf]   ;;  %s93_s24 = smov 48   ;;  %s94_s25 = smov 32   ;;  %vm33_vm5 = vcmask 523648  }
   0x6   :  { %13 = vrot.lane.b32.xlu0 %v73_v2, %s91_s16  ;;  %25 = vrot.lane.b32.xlu1 %v75_v3, %s92_s19  ;;  %v78_v7 = vld [vmem:[%s142_s0 + $0x1] ss:$8 sm:$0xf]   ;;  %s95_s0 = smov 16   ;;  %vm39_vm6 = vcmask 392448   ;;  %vm45_vm7 = vcmask 261248  }
   0xa   :  { %31 = vrot.lane.b32.xlu0 %v76_v5, %s93_s24  ;;  %37 = vrot.lane.b32.xlu1 %v77_v6, %s94_s25 }
   0xe   :  { %43 = vrot.lane.b32.xlu0 %v78_v7, %s95_s0 }
  0x74   :  { %v8_v8 = vpop.permute.xlu0 %7   ;;  %v20_v9 = vpop.permute.xlu1 %19  }
  0x75   :  { %10 = vst.msk [vmem:[#allocation0] ss:$8 sm:$0xf] %vm9_vm1, %v8_v8  }
  0x78   :  { %v14_v10 = vpop.permute.xlu0 %13   ;;  %v26_v11 = vpop.permute.xlu1 %25  }
  0x79   :  { %16 = vst.msk [vmem:[#allocation0] ss:$8 sm:$0xf] %vm15_vm2, %v14_v10  }
  0x7a   :  { %22 = vst.msk [vmem:[#allocation0] ss:$8 sm:$0xf] %vm21_vm3, %v20_v9  }
  0x7b   :  { %28 = vst.msk [vmem:[#allocation0] ss:$8 sm:$0xf] %vm27_vm4, %v26_v11  }
  0x7c   :  { %v32_v12 = vpop.permute.xlu0 %31   ;;  %v38_v13 = vpop.permute.xlu1 %37  }
  0x7d   :  { %34 = vst.msk [vmem:[#allocation0] ss:$8 sm:$0xf] %vm33_vm5, %v32_v12  }
  0x7e   :  { %40 = vst.msk [vmem:[#allocation0] ss:$8 sm:$0xf] %vm39_vm6, %v38_v13  }
  0x80   :  { %v44_v14 = vpop.permute.xlu0 %43  }
  0x81   :  { %46 = vst.msk [vmem:[#allocation0] ss:$8 sm:$0xf] %vm45_vm7, %v44_v14  }
  0x88   :  { %v50_v15 = vld [vmem:[#allocation0] sm:$0x1]  ;;  %v54_v16 = vld [vmem:[#allocation0 + $0x8] sm:$0x1]  ;;  %v59_v17 = vld [vmem:[#allocation0 + $0x10] sm:$0x1] }
  0x89   :  { %52 = vst [vmem:[%s143_s1] sm:$0x1] %v50_v15  ;;  %79 = vst [vmem:[%s143_s1 + $0x1] sm:$0x1] %v54_v16  ;;  %v65_v18 = vld [vmem:[#allocation0 + $0x18] sm:$0x1] }
  0x8a   :  { %80 = vst [vmem:[%s143_s1 + $0x2] sm:$0x1] %v59_v17  ;;  %81 = vst [vmem:[%s143_s1 + $0x3] sm:$0x1] %v65_v18 }

// kernel: edup_forward.3
= control target key start
LH: loop header
LB: loop body
LE: loop exit
PB: predicated region body
PF: predicated region fallthrough
CT: control target
= control target key end

     0   :  { %s1063_s21 = smov 0   ;;  %s1624_s0 = inlined_call_operand.vmem [shape: f32[256,128], index: 0, kind: input, shape index: {}]   ;;  %s1625_s1 = inlined_call_operand.vmem [shape: f32[1,128], index: 1, kind: input, shape index: {}]   ;;  %s1626_s2 = inlined_call_operand.vmem [shape: f32[1,128], index: 2, kind: input, shape index: {}]   ;;  %s1627_s3 = inlined_call_operand.vmem [shape: f32[128,512], index: 3, kind: input, shape index: {}]   ;;  %s1628_s4 = inlined_call_operand.vmem [shape: f32[1,512], index: 4, kind: input, shape index: {}]   ;;  %s1629_s5 = inlined_call_operand.vmem [shape: f32[256,128], index: 5, kind: output, shape index: {0}]   ;;  %s1630_s6 = inlined_call_operand.vmem [shape: f32[256,512], index: 6, kind: output, shape index: {1}]  }
   0x1 LB: > { %s929_s22 = sadd.s32 4294967295, %s1025_s21   ;;  %p933_p0 = scmp.ge.s32.totalorder %s1025_s21, 1  ;;  %s1025_s21 = sphi %s1063_s21, %s17_s21  }
   0x2   : > { %p216_p1 = scmp.lt.s32.totalorder %s1025_s21, 3 }
   0x4   : > { %p217_p2 = pnand %p933_p0, %p216_p1 }
   0x5   : > { %v366_v0 = vld [vmem:[%s1627_s3 + $0x8] sm:$0xff] (!%p217_p2)  ;;  %v368_v2 = vld [vmem:[%s1627_s3 + $0x18] sm:$0xff] (!%p217_p2)  ;;  %v365_v5 = vld [vmem:[%s1627_s3] sm:$0xff] (!%p217_p2)  ;;  %v1027_v7 = vmov (!%p217_p2), 0.0   ;;  %s1120_s7 = sshll.u32 (!%p217_p2), %s929_s22, 4 }
   0x6   : > { %220 = sbr.rel (%p217_p2) target bundleno = 318 (0x13e), region = 40  ;;  %v370_v1 = vld [vmem:[%s1627_s3 + $0x28] sm:$0xff] (!%p217_p2)  ;;  %v372_v4 = vld [vmem:[%s1627_s3 + $0x38] sm:$0xff] (!%p217_p2)  ;;  %v369_v6 = vld [vmem:[%s1627_s3 + $0x20] sm:$0xff] (!%p217_p2)  ;;  %515 = vmatprep.mubr.f32.mxu0 (!%p217_p2), %v1027_v7  ;;  %676 = vmatprep.mubr.f32.mxu1 (!%p217_p2), %v1027_v7  ;;  %p253_p3 = scmp.lt.s32.totalorder (!%p217_p2), %s1120_s7, 31 }
   0x7   : > { %v946_v3 = vpack.c.bf16 (!%p217_p2), %v370_v1, %v366_v0  ;;  %v978_v8 = vpack.c.bf16 (!%p217_p2), %v372_v4, %v368_v2  ;;  %v948_v9 = vpack.c.bf16 (!%p217_p2), %v369_v6, %v365_v5  ;;  %v367_v10 = vld [vmem:[%s1627_s3 + $0x10] sm:$0xff] (!%p217_p2)  ;;  %v374_v12 = vld [vmem:[%s1627_s3 + $0x48] sm:$0xff] (!%p217_p2)  ;;  %v376_v15 = vld [vmem:[%s1627_s3 + $0x58] sm:$0xff] (!%p217_p2) }
   0x8   : > { %v371_v11 = vld [vmem:[%s1627_s3 + $0x30] sm:$0xff] (!%p217_p2)  ;;  %v378_v14 = vld [vmem:[%s1627_s3 + $0x68] sm:$0xff] (!%p217_p2)  ;;  %v380_v16 = vld [vmem:[%s1627_s3 + $0x78] sm:$0xff] (!%p217_p2) }
   0x9   : > { %947 = vmatprep.subr.bf16.mxu0 (!%p217_p2), %v946_v3  ;;  %v980_v13 = vpack.c.bf16 (!%p217_p2), %v371_v11, %v367_v10  ;;  %979 = vmatprep.subr.bf16.mxu1 (!%p217_p2), %v978_v8  ;;  %v950_v17 = vpack.c.bf16 (!%p217_p2), %v378_v14, %v374_v12  ;;  %v982_v18 = vpack.c.bf16 (!%p217_p2), %v380_v16, %v376_v15  ;;  %v373_v19 = vld [vmem:[%s1627_s3 + $0x40] sm:$0xff] (!%p217_p2)  ;;  %v375_v21 = vld [vmem:[%s1627_s3 + $0x50] sm:$0xff] (!%p217_p2)  ;;  %v382_v24 = vld [vmem:[%s1627_s3 + $0x88] sm:$0xff] (!%p217_p2) }
   0xa   : > { %949 = vmatpush1.bf16.msra.mxu0 (!%p217_p2), %v948_v9  ;;  %v377_v20 = vld [vmem:[%s1627_s3 + $0x60] sm:$0xff] (!%p217_p2)  ;;  %v379_v23 = vld [vmem:[%s1627_s3 + $0x70] sm:$0xff] (!%p217_p2)  ;;  %v386_v25 = vld [vmem:[%s1627_s3 + $0xa8] sm:$0xff] (!%p217_p2) }
   0xb   : > { %981 = vmatpush1.bf16.msra.mxu1 (!%p217_p2), %v980_v13  ;;  %v952_v22 = vpack.c.bf16 (!%p217_p2), %v377_v20, %v373_v19  ;;  %951 = vmatprep.subr.bf16.mxu0 (!%p217_p2), %v950_v17  ;;  %v984_v26 = vpack.c.bf16 (!%p217_p2), %v379_v23, %v375_v21  ;;  %v954_v27 = vpack.c.bf16 (!%p217_p2), %v386_v25, %v382_v24  ;;  %v384_v28 = vld [vmem:[%s1627_s3 + $0x98] sm:$0xff] (!%p217_p2)  ;;  %v381_v30 = vld [vmem:[%s1627_s3 + $0x80] sm:$0xff] (!%p217_p2)  ;;  %v383_v33 = vld [vmem:[%s1627_s3 + $0x90] sm:$0xff] (!%p217_p2) }
   0xc   : > { %983 = vmatprep.subr.bf16.mxu1 (!%p217_p2), %v982_v18  ;;  %v388_v29 = vld [vmem:[%s1627_s3 + $0xb8] sm:$0xff] (!%p217_p2)  ;;  %v385_v32 = vld [vmem:[%s1627_s3 + $0xa0] sm:$0xff] (!%p217_p2)  ;;  %v387_v34 = vld [vmem:[%s1627_s3 + $0xb0] sm:$0xff] (!%p217_p2) }
   0xd   : > { %v986_v31 = vpack.c.bf16 %v388_v29, %v384_v28  ;;  %v956_v35 = vpack.c.bf16 %v385_v32, %v381_v30  ;;  %v390_v36 = vld [vmem:[%s1627_s3 + $0xc8] sm:$0xff]  ;;  %v392_v38 = vld [vmem:[%s1627_s3 + $0xd8] sm:$0xff]  ;;  %v988_v39 = vpack.c.bf16 %v387_v34, %v383_v33  ;;  %v389_v42 = vld [vmem:[%s1627_s3 + $0xc0] sm:$0xff]  ;;  %s1632_s7 = smov (!%p253_p3, %s1120_s7), 31 }
   0xe   : > { %953 = vmatpush1.bf16.msra.mxu0 %v952_v22  ;;  %v394_v37 = vld [vmem:[%s1627_s3 + $0xe8] sm:$0xff]  ;;  %v396_v41 = vld [vmem:[%s1627_s3 + $0xf8] sm:$0xff]  ;;  %v393_v43 = vld [vmem:[%s1627_s3 + $0xe0] sm:$0xff]  ;;  %s935_s8 = sshll.u32 %s1632_s7, 3  ;;  %s945_s10 = sshll.u32 %s1632_s7, 5 }
   0xf   : > { %985 = vmatpush1.bf16.msra.mxu1 %v984_v26  ;;  %955 = vmatprep.subr.bf16.mxu0 %v954_v27  ;;  %v958_v40 = vpack.c.bf16 %v394_v37, %v390_v36  ;;  %v990_v44 = vpack.c.bf16 %v396_v41, %v392_v38  ;;  %v391_v45 = vld [vmem:[%s1627_s3 + $0xd0] sm:$0xff]  ;;  %v398_v47 = vld [vmem:[%s1627_s3 + $0x108] sm:$0xff]  ;;  %v400_v49 = vld [vmem:[%s1627_s3 + $0x118] sm:$0xff]  ;;  %v960_v51 = vpack.c.bf16 %v393_v43, %v389_v42  ;;  %s1270_s30 = scalar_lea.vmem %s1624_s0, %s935_s8  ;;  %s1349_s9 = scalar_lea.vmem %s1629_s5, %s935_s8 }
  0x10   : > { %987 = vmatprep.subr.bf16.mxu1 %v986_v31  ;;  %v395_v46 = vld [vmem:[%s1627_s3 + $0xf0] sm:$0xff]  ;;  %v402_v48 = vld [vmem:[%s1627_s3 + $0x128] sm:$0xff]  ;;  %v404_v50 = vld [vmem:[%s1627_s3 + $0x138] sm:$0xff]  ;;  %s1491_s13 = scalar_lea.vmem %s1630_s6, %s945_s10 }
  0x11   : > { %v397_v52 = vld [vmem:[%s1627_s3 + $0x100] sm:$0xff]  ;;  %v992_v54 = vpack.c.bf16 %v395_v46, %v391_v45  ;;  %v962_v55 = vpack.c.bf16 %v402_v48, %v398_v47  ;;  %v399_v56 = vld [vmem:[%s1627_s3 + $0x110] sm:$0xff]  ;;  %v406_v58 = vld [vmem:[%s1627_s3 + $0x148] sm:$0xff]  ;;  %v994_v59 = vpack.c.bf16 %v404_v50, %v400_v49 }
  0x12   : > { %957 = vmatpush1.bf16.msra.mxu0 %v956_v35  ;;  %v401_v53 = vld [vmem:[%s1627_s3 + $0x120] sm:$0xff]  ;;  %v403_v57 = vld [vmem:[%s1627_s3 + $0x130] sm:$0xff]  ;;  %v410_v60 = vld [vmem:[%s1627_s3 + $0x168] sm:$0xff] }
  0x13   : > { %989 = vmatpush1.bf16.msra.mxu1 %v988_v39  ;;  %959 = vmatprep.subr.bf16.mxu0 %v958_v40  ;;  %v408_v61 = vld [vmem:[%s1627_s3 + $0x158] sm:$0xff]  ;;  %v405_v63 = vld [vmem:[%s1627_s3 + $0x140] sm:$0xff]  ;;  %v407_v1 = vld [vmem:[%s1627_s3 + $0x150] sm:$0xff]  ;;  %v964_v3 = vpack.c.bf16 %v401_v53, %v397_v52  ;;  %v996_v8 = vpack.c.bf16 %v403_v57, %v399_v56  ;;  %v966_v9 = vpack.c.bf16 %v410_v60, %v406_v58 }
  0x14   : > { %991 = vmatprep.subr.bf16.mxu1 %v990_v44  ;;  %v412_v62 = vld [vmem:[%s1627_s3 + $0x178] sm:$0xff]  ;;  %v409_v0 = vld [vmem:[%s1627_s3 + $0x160] sm:$0xff]  ;;  %v411_v2 = vld [vmem:[%s1627_s3 + $0x170] sm:$0xff] }
  0x15   : > { %v414_v4 = vld [vmem:[%s1627_s3 + $0x188] sm:$0xff]  ;;  %v416_v6 = vld [vmem:[%s1627_s3 + $0x198] sm:$0xff]  ;;  %v1243_v11 = vld [vmem:[%s1627_s3 + $0x180] sm:$0xff]  ;;  %v998_v13 = vpack.c.bf16 %v412_v62, %v408_v61  ;;  %v968_v20 = vpack.c.bf16 %v409_v0, %v405_v63  ;;  %v1000_v21 = vpack.c.bf16 %v411_v2, %v407_v1 }
  0x16   : > { %961 = vmatpush1.bf16.msra.mxu0 %v960_v51  ;;  %v418_v5 = vld [vmem:[%s1627_s3 + $0x1a8] sm:$0xff]  ;;  %v420_v10 = vld [vmem:[%s1627_s3 + $0x1b8] sm:$0xff]  ;;  %v1248_v12 = vld [vmem:[%s1627_s3 + $0x1a0] sm:$0xff] }
  0x17   : > { %993 = vmatpush1.bf16.msra.mxu1 %v992_v54  ;;  %963 = vmatprep.subr.bf16.mxu0 %v962_v55  ;;  %v1253_v14 = vld [vmem:[%s1627_s3 + $0x190] sm:$0xff]  ;;  %v1263_v16 = vld [vmem:[%s1627_s3 + $0x1c8] sm:$0xff]  ;;  %v1280_v18 = vld [vmem:[%s1627_s3 + $0x1d8] sm:$0xff]  ;;  %v970_v25 = vpack.c.bf16 %v418_v5, %v414_v4  ;;  %v1002_v26 = vpack.c.bf16 %v420_v10, %v416_v6  ;;  %v972_v27 = vpack.c.bf16 %v1248_v12, %v1243_v11 }
  0x18   : > { %995 = vmatprep.subr.bf16.mxu1 %v994_v59  ;;  %v1258_v15 = vld [vmem:[%s1627_s3 + $0x1b0] sm:$0xff]  ;;  %v1275_v17 = vld [vmem:[%s1627_s3 + $0x1e8] sm:$0xff]  ;;  %v1285_v19 = vld [vmem:[%s1627_s3 + $0x1f8] sm:$0xff] }
  0x19   : > { %v1290_v22 = vld [vmem:[%s1627_s3 + $0x1c0] sm:$0xff]  ;;  %v1300_v24 = vld [vmem:[%s1627_s3 + $0x1d0] sm:$0xff]  ;;  %v1004_v31 = vpack.c.bf16 %v1258_v15, %v1253_v14  ;;  %v974_v32 = vpack.c.bf16 %v1275_v17, %v1263_v16  ;;  %v1006_v33 = vpack.c.bf16 %v1285_v19, %v1280_v18  ;;  %v272_v36 = vld [vmem:[%s1270_s30 + $0x8] sm:$0xff] }
  0x1a   : > { %965 = vmatpush1.bf16.msra.mxu0 %v964_v3  ;;  %v1295_v23 = vld [vmem:[%s1627_s3 + $0x1e0] sm:$0xff]  ;;  %v1307_v28 = vld [vmem:[%s1627_s3 + $0x1f0] sm:$0xff]  ;;  %v274_v42 = vld [vmem:[%s1270_s30 + $0x18] sm:$0xff] }
  0x1b   : > { %997 = vmatpush1.bf16.msra.mxu1 %v996_v8  ;;  %967 = vmatprep.subr.bf16.mxu0 %v966_v9  ;;  %v271_v29 = vld [vmem:[%s1270_s30] sm:$0xff]  ;;  %v273_v37 = vld [vmem:[%s1270_s30 + $0x10] sm:$0xff]  ;;  %v976_v38 = vpack.c.bf16 %v1295_v23, %v1290_v22  ;;  %v1008_v39 = vpack.c.bf16 %v1307_v28, %v1300_v24  ;;  %v276_v44 = vld [vmem:[%s1270_s30 + $0x28] sm:$0xff] }
  0x1c   : > { %v1313_v30 = vld [vmem:[%s1625_s1] ss:$0 sm:$0xff]  ;;  %999 = vmatprep.subr.bf16.mxu1 %v998_v13  ;;  %v277_v49 = vld [vmem:[%s1270_s30 + $0x30] sm:$0xff]  ;;  %v278_v50 = vld [vmem:[%s1270_s30 + $0x38] sm:$0xff] }
  0x1d   : > { %v294_v34 = vmul.f32 %v1313_v30, %v271_v29  ;;  %v1325_v35 = vld [vmem:[%s1626_s2] ss:$0 sm:$0xff]  ;;  %v295_v40 = vmul.f32 %v1313_v30, %v272_v36  ;;  %v296_v41 = vmul.f32 %v1313_v30, %v273_v37  ;;  %v297_v46 = vmul.f32 %v1313_v30, %v274_v42  ;;  %v280_v59 = vld [vmem:[%s1270_s30 + $0x48] sm:$0xff]  ;;  %v281_v60 = vld [vmem:[%s1270_s30 + $0x50] sm:$0xff] }
  0x1e   : > { %v275_v43 = vld [vmem:[%s1270_s30 + $0x20] sm:$0xff]  ;;  %969 = vmatpush1.bf16.msra.mxu0 %v968_v20  ;;  %v299_v48 = vmul.f32 %v1313_v30, %v276_v44  ;;  %v300_v53 = vmul.f32 %v1313_v30, %v277_v49  ;;  %v301_v0 = vmul.f32 %v1313_v30, %v278_v50  ;;  %v282_v1 = vld [vmem:[%s1270_s30 + $0x58] sm:$0xff]  ;;  %v284_v3 = vld [vmem:[%s1270_s30 + $0x68] sm:$0xff]  ;;  %v303_v12 = vmul.f32 %v1313_v30, %v280_v59 }
  0x1f   : > { %v317_v45 = vadd.f32 %v1325_v35, %v294_v34  ;;  %v298_v47 = vmul.f32 %v1313_v30, %v275_v43  ;;  %1001 = vmatpush1.bf16.msra.mxu1 %v1000_v21  ;;  %971 = vmatprep.subr.bf16.mxu0 %v970_v25  ;;  %v318_v51 = vadd.f32 %v1325_v35, %v295_v40  ;;  %v279_v54 = vld [vmem:[%s1270_s30 + $0x40] sm:$0xff]  ;;  %v285_v9 = vld [vmem:[%s1270_s30 + $0x70] sm:$0xff]  ;;  %v286_v18 = vld [vmem:[%s1270_s30 + $0x78] sm:$0xff] }
  0x20   : > { %v319_v52 = vadd.f32 %v1325_v35, %v296_v41  ;;  %1003 = vmatprep.subr.bf16.mxu1 %v1002_v26  ;;  %v320_v56 = vadd.f32 %v1325_v35, %v297_v46  ;;  %v322_v58 = vadd.f32 %v1325_v35, %v299_v48  ;;  %v323_v63 = vadd.f32 %v1325_v35, %v300_v53  ;;  %v283_v2 = vld [vmem:[%s1270_s30 + $0x60] sm:$0xff] }
  0x21   : > { %v333_v55 = vmax.f32 %v317_v45, 0.0  ;;  %v321_v57 = vadd.f32 %v1325_v35, %v298_v47  ;;  %v1360_v61 = vmax.f32 %v318_v51, 0.0  ;;  %v302_v8 = vmul.f32 %v1313_v30, %v279_v54  ;;  %v429_v40 = vld [vmem:[%s1628_s4] sm:$0xf] }
  0x22   : > { %v1362_v62 = vmax.f32 %v319_v52, 0.0  ;;  %973 = vmatpush1.bf16.msra.mxu0 %v972_v27  ;;  %v1370_v4 = vmax.f32 %v320_v56, 0.0  ;;  %v1374_v6 = vmax.f32 %v322_v58, 0.0  ;;  %v1382_v10 = vmax.f32 %v323_v63, 0.0 }
  0x23   : > { %349 = vst [vmem:[%s1349_s9] sm:$0xff] %v333_v55  ;;  %v1372_v5 = vmax.f32 %v321_v57, 0.0  ;;  %1005 = vmatpush1.bf16.msra.mxu1 %v1004_v31  ;;  %975 = vmatprep.subr.bf16.mxu0 %v974_v32  ;;  %350 = vst [vmem:[%s1349_s9 + $0x8] sm:$0xff] %v1360_v61  ;;  %v324_v11 = vadd.f32 %v1325_v35, %v301_v0  ;;  %v304_v13 = vmul.f32 %v1313_v30, %v281_v60 }
  0x24   : > { %351 = vst [vmem:[%s1349_s9 + $0x10] sm:$0xff] %v1362_v62  ;;  %1007 = vmatprep.subr.bf16.mxu1 %v1006_v33  ;;  %352 = vst [vmem:[%s1349_s9 + $0x18] sm:$0xff] %v1370_v4  ;;  %v325_v14 = vadd.f32 %v1325_v35, %v302_v8  ;;  %v305_v15 = vmul.f32 %v1313_v30, %v282_v1  ;;  %v306_v16 = vmul.f32 %v1313_v30, %v283_v2 }
  0x25   : > { %353 = vst [vmem:[%s1349_s9 + $0x20] sm:$0xff] %v1372_v5  ;;  %354 = vst [vmem:[%s1349_s9 + $0x28] sm:$0xff] %v1374_v6  ;;  %v307_v17 = vmul.f32 %v1313_v30, %v284_v3  ;;  %v340_v19 = vmax.f32 %v324_v11, 0.0  ;;  %v326_v20 = vadd.f32 %v1325_v35, %v303_v12  ;;  %v327_v21 = vadd.f32 %v1325_v35, %v304_v13 }
  0x26   : > { %355 = vst [vmem:[%s1349_s9 + $0x30] sm:$0xff] %v1382_v10  ;;  %v308_v25 = vmul.f32 %v1313_v30, %v285_v9  ;;  %977 = vmatpush1.bf16.msra.mxu0 %v976_v38  ;;  %v341_v26 = vmax.f32 %v325_v14, 0.0  ;;  %v328_v27 = vadd.f32 %v1325_v35, %v305_v15  ;;  %v329_v29 = vadd.f32 %v1325_v35, %v306_v16 }
  0x27   : > { %v330_v31 = vadd.f32 %v1325_v35, %v307_v17  ;;  %1009 = vmatpush1.bf16.msra.mxu1 %v1008_v39  ;;  %356 = vst [vmem:[%s1349_s9 + $0x38] sm:$0xff] %v340_v19  ;;  %v342_v32 = vmax.f32 %v326_v20, 0.0  ;;  %v343_v33 = vmax.f32 %v327_v21, 0.0  ;;  %v309_v23 = vmul.f32 %v1313_v30, %v286_v18 }
  0x28   : > { %v331_v22 = vadd.f32 %v1325_v35, %v308_v25  ;;  %357 = vst [vmem:[%s1349_s9 + $0x40] sm:$0xff] %v341_v26  ;;  %v344_v34 = vmax.f32 %v328_v27, 0.0  ;;  %v345_v36 = vmax.f32 %v329_v29, 0.0 }
  0x29   : > { %v1416_v37 = vmax.f32 %v330_v31, 0.0  ;;  %516 = vmatmul.mubr.f32.vlgmr.msra.gmra.mrb[0].mxu0 %v333_v55  ;;  %358 = vst [vmem:[%s1349_s9 + $0x48] sm:$0xff] %v342_v32  ;;  %359 = vst [vmem:[%s1349_s9 + $0x50] sm:$0xff] %v343_v33  ;;  %v332_v28 = vadd.f32 %v1325_v35, %v309_v23  ;;  %v431_v35 = vlaneseq }
  0x2a   : > { %v1420_v24 = vmax.f32 %v331_v22, 0.0  ;;  %677 = vmatmul.mubr.f32.vlgmr.msra.gmra.mrb[0].mxu1 %v333_v55  ;;  %521 = vmatprep.mubr.f32.mxu0 %v1027_v7  ;;  %360 = vst [vmem:[%s1349_s9 + $0x58] sm:$0xff] %v344_v34  ;;  %361 = vst [vmem:[%s1349_s9 + $0x60] sm:$0xff] %v345_v36 }
  0x2b   : > { %362 = vst [vmem:[%s1349_s9 + $0x68] sm:$0xff] %v1416_v37  ;;  %682 = vmatprep.mubr.f32.mxu1 %v1027_v7  ;;  %v348_v30 = vmax.f32 %v332_v28, 0.0  ;;  %v432_v38 = vshrl.u32 %v431_v35, 7 }
  0x2c   : > { %363 = vst [vmem:[%s1349_s9 + $0x70] sm:$0xff] %v1420_v24 }
  0x2d   : > { %522 = vmatmul.mubr.f32.gmra.mrb[2].mxu0 %v1360_v61  ;;  %364 = vst [vmem:[%s1349_s9 + $0x78] sm:$0xff] %v348_v30  ;;  %v433_v39 = vsub.s32 0, %v432_v38  ;;  %v441_v41 = vsub.s32 2, %v432_v38  ;;  %v437_v42 = vsub.s32 1, %v432_v38  ;;  %v445_v43 = vsub.s32 3, %v432_v38 }
  0x2e   : > { %683 = vmatmul.mubr.f32.gmra.mrb[2].mxu1 %v1360_v61  ;;  %527 = vmatprep.mubr.f32.mxu0 %v1027_v7 }
  0x2f   : > { %688 = vmatprep.mubr.f32.mxu1 %v1027_v7  ;;  %v1480_v44 = vrot.slane %v429_v40, %v433_v39  ;;  %v1482_v45 = vrot.slane %v429_v40, %v441_v41  ;;  %v1484_v46 = vrot.slane %v429_v40, %v437_v42 }
  0x31   : > { %528 = vmatmul.mubr.f32.gmra.mrb[4].mxu0 %v1362_v62 }
  0x32   : > { %689 = vmatmul.mubr.f32.gmra.mrb[4].mxu1 %v1362_v62  ;;  %533 = vmatprep.mubr.f32.mxu0 %v1027_v7 }
  0x33   : > { %694 = vmatprep.mubr.f32.mxu1 %v1027_v7 }
  0x35   : > { %534 = vmatmul.mubr.f32.gmra.mrb[6].mxu0 %v1370_v4 }
  0x36   : > { %695 = vmatmul.mubr.f32.gmra.mrb[6].mxu1 %v1370_v4  ;;  %539 = vmatprep.mubr.f32.mxu0 %v1027_v7 }
  0x37   : > { %700 = vmatprep.mubr.f32.mxu1 %v1027_v7 }
  0x39   : > { %540 = vmatmul.mubr.f32.gmra.mrb[8].mxu0 %v1372_v5 }
  0x3a   : > { %701 = vmatmul.mubr.f32.gmra.mrb[8].mxu1 %v1372_v5  ;;  %545 = vmatprep.mubr.f32.mxu0 %v1027_v7 }
  0x3b   : > { %706 = vmatprep.mubr.f32.mxu1 %v1027_v7 }
  0x3d   : > { %546 = vmatmul.mubr.f32.gmra.mrb[10].mxu0 %v1374_v6 }
  0x3e   : > { %707 = vmatmul.mubr.f32.gmra.mrb[10].mxu1 %v1374_v6  ;;  %551 = vmatprep.mubr.f32.mxu0 %v1027_v7 }
  0x3f   : > { %712 = vmatprep.mubr.f32.mxu1 %v1027_v7 }
  0x41   : > { %552 = vmatmul.mubr.f32.gmra.mrb[12].mxu0 %v1382_v10 }
  0x42   : > { %713 = vmatmul.mubr.f32.gmra.mrb[12].mxu1 %v1382_v10  ;;  %557 = vmatprep.mubr.f32.mxu0 %v1027_v7 }
  0x43   : > { %718 = vmatprep.mubr.f32.mxu1 %v1027_v7 }
  0x45   : > { %558 = vmatmul.mubr.f32.gmra.mrb[14].mxu0 %v340_v19 }
  0x46   : > { %719 = vmatmul.mubr.f32.gmra.mrb[14].mxu1 %v340_v19  ;;  %563 = vmatprep.mubr.f32.mxu0 %v1027_v7 }
  0x47   : > { %724 = vmatprep.mubr.f32.mxu1 %v1027_v7 }
  0x49   : > { %564 = vmatmul.mubr.f32.gmra.mrb[16].mxu0 %v341_v26 }
  0x4a   : > { %725 = vmatmul.mubr.f32.gmra.mrb[16].mxu1 %v341_v26  ;;  %569 = vmatprep.mubr.f32.mxu0 %v1027_v7 }
  0x4b   : > { %730 = vmatprep.mubr.f32.mxu1 %v1027_v7 }
  0x4d   : > { %570 = vmatmul.mubr.f32.gmra.mrb[18].mxu0 %v342_v32 }
  0x4e   : > { %731 = vmatmul.mubr.f32.gmra.mrb[18].mxu1 %v342_v32  ;;  %575 = vmatprep.mubr.f32.mxu0 %v1027_v7 }
  0x4f   : > { %736 = vmatprep.mubr.f32.mxu1 %v1027_v7 }
  0x51   : > { %576 = vmatmul.mubr.f32.gmra.mrb[20].mxu0 %v343_v33 }
  0x52   : > { %737 = vmatmul.mubr.f32.gmra.mrb[20].mxu1 %v343_v33  ;;  %581 = vmatprep.mubr.f32.mxu0 %v1027_v7 }
  0x53   : > { %742 = vmatprep.mubr.f32.mxu1 %v1027_v7 }
  0x55   : > { %582 = vmatmul.mubr.f32.gmra.mrb[22].mxu0 %v344_v34 }
  0x56   : > { %743 = vmatmul.mubr.f32.gmra.mrb[22].mxu1 %v344_v34  ;;  %587 = vmatprep.mubr.f32.mxu0 %v1027_v7 }
  0x57   : > { %748 = vmatprep.mubr.f32.mxu1 %v1027_v7 }
  0x59   : > { %588 = vmatmul.mubr.f32.gmra.mrb[24].mxu0 %v345_v36 }
  0x5a   : > { %749 = vmatmul.mubr.f32.gmra.mrb[24].mxu1 %v345_v36  ;;  %593 = vmatprep.mubr.f32.mxu0 %v1027_v7 }
  0x5b   : > { %754 = vmatprep.mubr.f32.mxu1 %v1027_v7 }
  0x5d   : > { %594 = vmatmul.mubr.f32.gmra.mrb[26].mxu0 %v1416_v37 }
  0x5e   : > { %755 = vmatmul.mubr.f32.gmra.mrb[26].mxu1 %v1416_v37  ;;  %599 = vmatprep.mubr.f32.mxu0 %v1027_v7 }
  0x5f   : > { %760 = vmatprep.mubr.f32.mxu1 %v1027_v7 }
  0x61   : > { %600 = vmatmul.mubr.f32.gmra.mrb[28].mxu0 %v1420_v24 }
  0x62   : > { %761 = vmatmul.mubr.f32.gmra.mrb[28].mxu1 %v1420_v24  ;;  %605 = vmatprep.mubr.f32.mxu0 %v1027_v7 }
  0x63   : > { %766 = vmatprep.mubr.f32.mxu1 %v1027_v7  ;;  %v1486_v7 = vrot.slane %v429_v40, %v445_v43 }
  0x65   : > { %606 = vmatmul.mubr.f32.gmra.mrb[30].mxu0 %v348_v30 }
  0x66   : > { %767 = vmatmul.mubr.f32.gmra.mrb[30].mxu1 %v348_v30 }
  0xfc   : > { %v517_v47 = vpop.f32.mrb[0].mxu0 }
  0xfd   : > { %v518_v48 = vadd.f32 %v517_v47, %v1480_v44  ;;  %v678_v49 = vpop.f32.mrb[0].mxu1  ;;  %v519_v50 = vpop.f32.mrb[1].mxu0 }
  0xfe   : > { %v679_v51 = vadd.f32 %v678_v49, %v1482_v45  ;;  %v520_v52 = vadd.f32 %v519_v50, %v1484_v46  ;;  %v680_v53 = vpop.f32.mrb[1].mxu1 }
  0xff   : > { %773 = vst [vmem:[%s1491_s13] sm:$0xff] %v518_v48  ;;  %v681_v54 = vadd.f32 %v680_v53, %v1486_v7 }
 0x100   : > { %775 = vst [vmem:[%s1491_s13 + $0x10] sm:$0xff] %v679_v51  ;;  %774 = vst [vmem:[%s1491_s13 + $0x8] sm:$0xff] %v520_v52  ;;  %v523_v55 = vpop.f32.mrb[2].mxu0 }
 0x101   : > { %776 = vst [vmem:[%s1491_s13 + $0x18] sm:$0xff] %v681_v54  ;;  %v524_v56 = vadd.f32 %v523_v55, %v1480_v44  ;;  %v684_v57 = vpop.f32.mrb[2].mxu1  ;;  %v525_v58 = vpop.f32.mrb[3].mxu0 }
 0x102   : > { %v685_v59 = vadd.f32 %v684_v57, %v1482_v45  ;;  %v526_v60 = vadd.f32 %v525_v58, %v1484_v46  ;;  %v686_v61 = vpop.f32.mrb[3].mxu1 }
 0x103   : > { %777 = vst [vmem:[%s1491_s13 + $0x20] sm:$0xff] %v524_v56  ;;  %v687_v62 = vadd.f32 %v686_v61, %v1486_v7 }
 0x104   : > { %779 = vst [vmem:[%s1491_s13 + $0x30] sm:$0xff] %v685_v59  ;;  %778 = vst [vmem:[%s1491_s13 + $0x28] sm:$0xff] %v526_v60  ;;  %v529_v63 = vpop.f32.mrb[4].mxu0 }
 0x105   : > { %780 = vst [vmem:[%s1491_s13 + $0x38] sm:$0xff] %v687_v62  ;;  %v530_v0 = vadd.f32 %v529_v63, %v1480_v44  ;;  %v690_v1 = vpop.f32.mrb[4].mxu1  ;;  %v531_v2 = vpop.f32.mrb[5].mxu0 }
 0x106   : > { %v691_v3 = vadd.f32 %v690_v1, %v1482_v45  ;;  %v532_v4 = vadd.f32 %v531_v2, %v1484_v46  ;;  %v692_v5 = vpop.f32.mrb[5].mxu1 }
 0x107   : > { %781 = vst [vmem:[%s1491_s13 + $0x40] sm:$0xff] %v530_v0  ;;  %v693_v6 = vadd.f32 %v692_v5, %v1486_v7 }
 0x108   : > { %783 = vst [vmem:[%s1491_s13 + $0x50] sm:$0xff] %v691_v3  ;;  %782 = vst [vmem:[%s1491_s13 + $0x48] sm:$0xff] %v532_v4  ;;  %v535_v8 = vpop.f32.mrb[6].mxu0 }
 0x109   : > { %784 = vst [vmem:[%s1491_s13 + $0x58] sm:$0xff] %v693_v6  ;;  %v536_v9 = vadd.f32 %v535_v8, %v1480_v44  ;;  %v696_v10 = vpop.f32.mrb[6].mxu1  ;;  %v537_v11 = vpop.f32.mrb[7].mxu0 }
 0x10a   : > { %v697_v12 = vadd.f32 %v696_v10, %v1482_v45  ;;  %v538_v13 = vadd.f32 %v537_v11, %v1484_v46  ;;  %v698_v14 = vpop.f32.mrb[7].mxu1 }
 0x10b   : > { %785 = vst [vmem:[%s1491_s13 + $0x60] sm:$0xff] %v536_v9  ;;  %v699_v15 = vadd.f32 %v698_v14, %v1486_v7 }
 0x10c   : > { %787 = vst [vmem:[%s1491_s13 + $0x70] sm:$0xff] %v697_v12  ;;  %786 = vst [vmem:[%s1491_s13 + $0x68] sm:$0xff] %v538_v13  ;;  %v541_v16 = vpop.f32.mrb[8].mxu0 }
 0x10d   : > { %788 = vst [vmem:[%s1491_s13 + $0x78] sm:$0xff] %v699_v15  ;;  %v542_v17 = vadd.f32 %v541_v16, %v1480_v44  ;;  %v702_v18 = vpop.f32.mrb[8].mxu1  ;;  %v543_v19 = vpop.f32.mrb[9].mxu0 }
 0x10e   : > { %v703_v20 = vadd.f32 %v702_v18, %v1482_v45  ;;  %v544_v21 = vadd.f32 %v543_v19, %v1484_v46  ;;  %v704_v25 = vpop.f32.mrb[9].mxu1 }
 0x10f   : > { %789 = vst [vmem:[%s1491_s13 + $0x80] sm:$0xff] %v542_v17  ;;  %v705_v26 = vadd.f32 %v704_v25, %v1486_v7 }
 0x110   : > { %791 = vst [vmem:[%s1491_s13 + $0x90] sm:$0xff] %v703_v20  ;;  %790 = vst [vmem:[%s1491_s13 + $0x88] sm:$0xff] %v544_v21  ;;  %v547_v27 = vpop.f32.mrb[10].mxu0 }
 0x111   : > { %792 = vst [vmem:[%s1491_s13 + $0x98] sm:$0xff] %v705_v26  ;;  %v548_v29 = vadd.f32 %v547_v27, %v1480_v44  ;;  %v708_v31 = vpop.f32.mrb[10].mxu1  ;;  %v549_v32 = vpop.f32.mrb[11].mxu0 }
 0x112   : > { %v709_v33 = vadd.f32 %v708_v31, %v1482_v45  ;;  %v550_v22 = vadd.f32 %v549_v32, %v1484_v46  ;;  %v710_v23 = vpop.f32.mrb[11].mxu1 }
 0x113   : > { %793 = vst [vmem:[%s1491_s13 + $0xa0] sm:$0xff] %v548_v29  ;;  %v711_v34 = vadd.f32 %v710_v23, %v1486_v7 }
 0x114   : > { %795 = vst [vmem:[%s1491_s13 + $0xb0] sm:$0xff] %v709_v33  ;;  %794 = vst [vmem:[%s1491_s13 + $0xa8] sm:$0xff] %v550_v22  ;;  %v553_v36 = vpop.f32.mrb[12].mxu0 }
 0x115   : > { %796 = vst [vmem:[%s1491_s13 + $0xb8] sm:$0xff] %v711_v34  ;;  %v554_v37 = vadd.f32 %v553_v36, %v1480_v44  ;;  %v714_v24 = vpop.f32.mrb[12].mxu1  ;;  %v555_v28 = vpop.f32.mrb[13].mxu0 }
 0x116   : > { %v715_v30 = vadd.f32 %v714_v24, %v1482_v45  ;;  %v556_v35 = vadd.f32 %v555_v28, %v1484_v46  ;;  %v716_v38 = vpop.f32.mrb[13].mxu1 }
 0x117   : > { %797 = vst [vmem:[%s1491_s13 + $0xc0] sm:$0xff] %v554_v37  ;;  %v717_v39 = vadd.f32 %v716_v38, %v1486_v7 }
 0x118   : > { %799 = vst [vmem:[%s1491_s13 + $0xd0] sm:$0xff] %v715_v30  ;;  %798 = vst [vmem:[%s1491_s13 + $0xc8] sm:$0xff] %v556_v35  ;;  %v559_v40 = vpop.f32.mrb[14].mxu0 }
 0x119   : > { %800 = vst [vmem:[%s1491_s13 + $0xd8] sm:$0xff] %v717_v39  ;;  %v560_v41 = vadd.f32 %v559_v40, %v1480_v44  ;;  %v720_v42 = vpop.f32.mrb[14].mxu1  ;;  %v561_v43 = vpop.f32.mrb[15].mxu0 }
 0x11a   : > { %v721_v47 = vadd.f32 %v720_v42, %v1482_v45  ;;  %v562_v48 = vadd.f32 %v561_v43, %v1484_v46  ;;  %v722_v49 = vpop.f32.mrb[15].mxu1 }
 0x11b   : > { %801 = vst [vmem:[%s1491_s13 + $0xe0] sm:$0xff] %v560_v41  ;;  %v723_v50 = vadd.f32 %v722_v49, %v1486_v7 }
 0x11c   : > { %803 = vst [vmem:[%s1491_s13 + $0xf0] sm:$0xff] %v721_v47  ;;  %802 = vst [vmem:[%s1491_s13 + $0xe8] sm:$0xff] %v562_v48  ;;  %v565_v51 = vpop.f32.mrb[16].mxu0 }
 0x11d   : > { %804 = vst [vmem:[%s1491_s13 + $0xf8] sm:$0xff] %v723_v50  ;;  %v566_v52 = vadd.f32 %v565_v51, %v1480_v44  ;;  %v726_v53 = vpop.f32.mrb[16].mxu1  ;;  %v567_v54 = vpop.f32.mrb[17].mxu0 }
 0x11e   : > { %v727_v55 = vadd.f32 %v726_v53, %v1482_v45  ;;  %v568_v56 = vadd.f32 %v567_v54, %v1484_v46  ;;  %v728_v57 = vpop.f32.mrb[17].mxu1 }
 0x11f   : > { %805 = vst [vmem:[%s1491_s13 + $0x100] sm:$0xff] %v566_v52  ;;  %v729_v58 = vadd.f32 %v728_v57, %v1486_v7 }
 0x120   : > { %807 = vst [vmem:[%s1491_s13 + $0x110] sm:$0xff] %v727_v55  ;;  %806 = vst [vmem:[%s1491_s13 + $0x108] sm:$0xff] %v568_v56  ;;  %v571_v59 = vpop.f32.mrb[18].mxu0 }
 0x121   : > { %808 = vst [vmem:[%s1491_s13 + $0x118] sm:$0xff] %v729_v58  ;;  %v572_v60 = vadd.f32 %v571_v59, %v1480_v44  ;;  %v732_v61 = vpop.f32.mrb[18].mxu1  ;;  %v573_v62 = vpop.f32.mrb[19].mxu0 }
 0x122   : > { %v733_v63 = vadd.f32 %v732_v61, %v1482_v45  ;;  %v574_v0 = vadd.f32 %v573_v62, %v1484_v46  ;;  %v734_v1 = vpop.f32.mrb[19].mxu1 }
 0x123   : > { %809 = vst [vmem:[%s1491_s13 + $0x120] sm:$0xff] %v572_v60  ;;  %v735_v2 = vadd.f32 %v734_v1, %v1486_v7 }
 0x124   : > { %811 = vst [vmem:[%s1491_s13 + $0x130] sm:$0xff] %v733_v63  ;;  %810 = vst [vmem:[%s1491_s13 + $0x128] sm:$0xff] %v574_v0  ;;  %v577_v3 = vpop.f32.mrb[20].mxu0 }
 0x125   : > { %812 = vst [vmem:[%s1491_s13 + $0x138] sm:$0xff] %v735_v2  ;;  %v578_v4 = vadd.f32 %v577_v3, %v1480_v44  ;;  %v738_v5 = vpop.f32.mrb[20].mxu1  ;;  %v579_v6 = vpop.f32.mrb[21].mxu0 }
 0x126   : > { %v739_v8 = vadd.f32 %v738_v5, %v1482_v45  ;;  %v580_v9 = vadd.f32 %v579_v6, %v1484_v46  ;;  %v740_v10 = vpop.f32.mrb[21].mxu1 }
 0x127   : > { %813 = vst [vmem:[%s1491_s13 + $0x140] sm:$0xff] %v578_v4  ;;  %v741_v11 = vadd.f32 %v740_v10, %v1486_v7 }
 0x128   : > { %815 = vst [vmem:[%s1491_s13 + $0x150] sm:$0xff] %v739_v8  ;;  %814 = vst [vmem:[%s1491_s13 + $0x148] sm:$0xff] %v580_v9  ;;  %v583_v12 = vpop.f32.mrb[22].mxu0 }
 0x129   : > { %816 = vst [vmem:[%s1491_s13 + $0x158] sm:$0xff] %v741_v11  ;;  %v584_v13 = vadd.f32 %v583_v12, %v1480_v44  ;;  %v744_v14 = vpop.f32.mrb[22].mxu1  ;;  %v585_v15 = vpop.f32.mrb[23].mxu0 }
 0x12a   : > { %v745_v16 = vadd.f32 %v744_v14, %v1482_v45  ;;  %v586_v17 = vadd.f32 %v585_v15, %v1484_v46  ;;  %v746_v18 = vpop.f32.mrb[23].mxu1 }
 0x12b   : > { %817 = vst [vmem:[%s1491_s13 + $0x160] sm:$0xff] %v584_v13  ;;  %v747_v19 = vadd.f32 %v746_v18, %v1486_v7 }
 0x12c   : > { %819 = vst [vmem:[%s1491_s13 + $0x170] sm:$0xff] %v745_v16  ;;  %818 = vst [vmem:[%s1491_s13 + $0x168] sm:$0xff] %v586_v17  ;;  %v589_v20 = vpop.f32.mrb[24].mxu0 }
 0x12d   : > { %820 = vst [vmem:[%s1491_s13 + $0x178] sm:$0xff] %v747_v19  ;;  %v590_v21 = vadd.f32 %v589_v20, %v1480_v44  ;;  %v750_v25 = vpop.f32.mrb[24].mxu1  ;;  %v591_v26 = vpop.f32.mrb[25].mxu0 }
 0x12e   : > { %v751_v27 = vadd.f32 %v750_v25, %v1482_v45  ;;  %v592_v29 = vadd.f32 %v591_v26, %v1484_v46  ;;  %v752_v31 = vpop.f32.mrb[25].mxu1 }
 0x12f   : > { %821 = vst [vmem:[%s1491_s13 + $0x180] sm:$0xff] %v590_v21  ;;  %v753_v32 = vadd.f32 %v752_v31, %v1486_v7 }
 0x130   : > { %823 = vst [vmem:[%s1491_s13 + $0x190] sm:$0xff] %v751_v27  ;;  %822 = vst [vmem:[%s1491_s13 + $0x188] sm:$0xff] %v592_v29  ;;  %v595_v33 = vpop.f32.mrb[26].mxu0 }
 0x131   : > { %824 = vst [vmem:[%s1491_s13 + $0x198] sm:$0xff] %v753_v32  ;;  %v596_v22 = vadd.f32 %v595_v33, %v1480_v44  ;;  %v756_v23 = vpop.f32.mrb[26].mxu1  ;;  %v597_v34 = vpop.f32.mrb[27].mxu0 }
 0x132   : > { %v757_v36 = vadd.f32 %v756_v23, %v1482_v45  ;;  %v598_v37 = vadd.f32 %v597_v34, %v1484_v46  ;;  %v758_v24 = vpop.f32.mrb[27].mxu1 }
 0x133   : > { %825 = vst [vmem:[%s1491_s13 + $0x1a0] sm:$0xff] %v596_v22  ;;  %v759_v28 = vadd.f32 %v758_v24, %v1486_v7 }
 0x134   : > { %827 = vst [vmem:[%s1491_s13 + $0x1b0] sm:$0xff] %v757_v36  ;;  %826 = vst [vmem:[%s1491_s13 + $0x1a8] sm:$0xff] %v598_v37  ;;  %v601_v30 = vpop.f32.mrb[28].mxu0 }
 0x135   : > { %828 = vst [vmem:[%s1491_s13 + $0x1b8] sm:$0xff] %v759_v28  ;;  %v602_v35 = vadd.f32 %v601_v30, %v1480_v44  ;;  %v762_v38 = vpop.f32.mrb[28].mxu1  ;;  %v603_v39 = vpop.f32.mrb[29].mxu0 }
 0x136   : > { %v763_v40 = vadd.f32 %v762_v38, %v1482_v45  ;;  %v604_v41 = vadd.f32 %v603_v39, %v1484_v46  ;;  %v764_v42 = vpop.f32.mrb[29].mxu1 }
 0x137   : > { %829 = vst [vmem:[%s1491_s13 + $0x1c0] sm:$0xff] %v602_v35  ;;  %v765_v43 = vadd.f32 %v764_v42, %v1486_v7 }
 0x138   : > { %831 = vst [vmem:[%s1491_s13 + $0x1d0] sm:$0xff] %v763_v40  ;;  %830 = vst [vmem:[%s1491_s13 + $0x1c8] sm:$0xff] %v604_v41  ;;  %v607_v47 = vpop.f32.mrb[30].mxu0 }
 0x139   : > { %832 = vst [vmem:[%s1491_s13 + $0x1d8] sm:$0xff] %v765_v43  ;;  %v608_v48 = vadd.f32 %v607_v47, %v1480_v44  ;;  %v768_v49 = vpop.f32.mrb[30].mxu1  ;;  %v609_v50 = vpop.f32.mrb[31].mxu0 }
 0x13a   : > { %v769_v51 = vadd.f32 %v768_v49, %v1482_v45  ;;  %v610_v52 = vadd.f32 %v609_v50, %v1484_v46  ;;  %v770_v53 = vpop.f32.mrb[31].mxu1 }
 0x13b   : > { %833 = vst [vmem:[%s1491_s13 + $0x1e0] sm:$0xff] %v608_v48  ;;  %v771_v54 = vadd.f32 %v770_v53, %v1486_v7 }
 0x13c   : > { %835 = vst [vmem:[%s1491_s13 + $0x1f0] sm:$0xff] %v769_v51  ;;  %834 = vst [vmem:[%s1491_s13 + $0x1e8] sm:$0xff] %v610_v52 }
 0x13d   : > { %836 = vst [vmem:[%s1491_s13 + $0x1f8] sm:$0xff] %v771_v54 }
 0x13e PF: > { %s17_s21 = sadd.s32 1, %s1025_s21  }
 0x13f   : > { %p14_p4 = scmp.ge.s32.totalorder %s17_s21, 4  }
 0x141   :  { %16 = sbr.rel (!%p14_p4) target bundleno = 1 (0x1), region = 82 }

</bundles_post_ra>
